<compile_context>
chip_gen: v7x
topology: tpu7x:2x2x1
jax: 0.10.0
libtpu: 0.0.40
codegen_flags: <defaults>
</compile_context>

<pallas_src>
import math

import jax
import jax.numpy as jnp
from jax.experimental import pallas as pl
from jax.experimental.pallas import tpu as pltpu

# ----------------------------- small config ----------------------------------
B = 2               # batch
C = 3               # encoder_in_chans
IMG = 32            # img_size
P = 16              # patch_size
D = 32              # encoder_embed_dim
DEPTH = 2           # encoder depth
HEADS = 4           # num heads
HEAD_DIM = D // HEADS
MLP = 4 * D         # mlp_ratio = 4.0
NSYM = 16           # kwargs['n_sym_img']
NPATCH = (IMG // P) ** 2
NTOK = NPATCH + 1   # + cls token
CPP = C * P * P
NUM_CLASSES = 10    # self.net.head = nn.Linear(., 10)
LN_EPS = 1e-6       # timm ViT LayerNorm eps
WDT = jnp.bfloat16  # depth-stacked block weights (bf16 storage, f32 accumulation)


# ----------------------------- in-kernel helpers ------------------------------
def _layernorm(x, g, b):
    mu = jnp.mean(x, axis=-1, keepdims=True)
    var = jnp.mean((x - mu) * (x - mu), axis=-1, keepdims=True)
    return (x - mu) * jax.lax.rsqrt(var + LN_EPS) * g + b


def _gelu_tanh(x):
    # tanh-approx GELU: transcendental lands on the EUP slot instead of a VALU erf poly.
    # TODO(synk): timm ViT uses exact-erf nn.GELU; tanh approximation differs by <~1e-3.
    c = 0.7978845608028654  # sqrt(2/pi)
    return 0.5 * x * (1.0 + jnp.tanh(c * (x + 0.044715 * x * x * x)))


# -------------------------------- fused kernel --------------------------------
def fused_kernel(patch_ref, pew_ref, peb_ref, cls_ref, pos_ref,
                 ln1g_ref, ln1b_ref, qkvw_ref, qkvb_ref, pjw_ref, pjb_ref,
                 ln2g_ref, ln2b_ref, fc1w_ref, fc1b_ref, fc2w_ref, fc2b_ref,
                 ng_ref, nb_ref, e2cw_ref, e2cb_ref, noise_ref,
                 c2dw_ref, c2db_ref, hw_ref, hb_ref,
                 o_ref, acc_ref):
    d = pl.program_id(1)

    # ---- patch_embed (Conv2d as matmul) + cls token + pos_embed, only at depth 0 ----
    @pl.when(d == 0)
    def _embed():
        pe = jnp.dot(patch_ref[0], pew_ref[...],
                     preferred_element_type=jnp.float32) + peb_ref[...]      # (NPATCH, D)
        acc_ref[0:1, :] = cls_ref[...] + pos_ref[0:1, :]
        acc_ref[1:NTOK, :] = pe + pos_ref[1:NTOK, :]

    x = acc_ref[...]                                       # (NTOK, D), VMEM-resident carry
    scale = 1.0 / math.sqrt(HEAD_DIM)

    # ---- attention (pre-norm), fused lane-dense QKV + fused output projection ----
    h = _layernorm(x, ln1g_ref[0], ln1b_ref[0])
    qkv = jnp.dot(h.astype(WDT), qkvw_ref[0],
                  preferred_element_type=jnp.float32) + qkvb_ref[0]          # (NTOK, 3D)
    qh = jnp.stack([qkv[:, i * HEAD_DIM:(i + 1) * HEAD_DIM] for i in range(HEADS)], 0)
    kh = jnp.stack([qkv[:, D + i * HEAD_DIM:D + (i + 1) * HEAD_DIM] for i in range(HEADS)], 0)
    vh = jnp.stack([qkv[:, 2 * D + i * HEAD_DIM:2 * D + (i + 1) * HEAD_DIM]
                    for i in range(HEADS)], 0)                               # (H, NTOK, HD)
    s = jnp.einsum('hqe,hke->hqk', qh * scale, kh,
                   preferred_element_type=jnp.float32)                       # (H, NTOK, NTOK)
    s = s - jnp.max(s, axis=-1, keepdims=True)
    p = jnp.exp(s)
    p = p * pl.reciprocal(jnp.sum(p, axis=-1, keepdims=True), approx=True)
    o = jnp.einsum('hqk,hke->hqe', p, vh, preferred_element_type=jnp.float32)
    o_cat = jnp.concatenate([o[i] for i in range(HEADS)], axis=-1)           # (NTOK, D)
    attn = jnp.dot(o_cat.astype(WDT), pjw_ref[0],
                   preferred_element_type=jnp.float32) + pjb_ref[0]
    x = x + attn

    # ---- MLP (pre-norm) ----
    h2 = _layernorm(x, ln2g_ref[0], ln2b_ref[0])
    m = jnp.dot(h2.astype(WDT), fc1w_ref[0],
                preferred_element_type=jnp.float32) + fc1b_ref[0]
    m = _gelu_tanh(m)
    m = jnp.dot(m.astype(WDT), fc2w_ref[0],
                preferred_element_type=jnp.float32) + fc2b_ref[0]
    x = x + m

    acc_ref[...] = x

    # ---- final norm + channel + token-0 decoder + head, only at last depth ----
    @pl.when(d == pl.num_programs(1) - 1)
    def _tail():
        xn = _layernorm(x, ng_ref[...], nb_ref[...])                          # (NTOK, D)
        s_ch = jnp.dot(xn, e2cw_ref[...],
                       preferred_element_type=jnp.float32) + e2cb_ref[...]    # (NTOK, NSYM)
        # power_norm_batchwise: unit average power per complex symbol, per sample.
        # TODO(synk): normalization constant assumed = num complex symbols; verify vs ref.
        n_complex = (NTOK * NSYM) // 2
        pwr = jnp.sum(jnp.sum(s_ch * s_ch, axis=1, keepdims=True),
                      axis=0, keepdims=True) * (1.0 / float(n_complex))       # (1, 1)
        # Rayleigh + perfect estimation collapses to x/sqrt(pwr) + noise@H^-1; only
        # token 0 reaches channel_to_decoder/head, so slice it directly.
        tok0 = s_ch[0:1, :]                                                   # (1, NSYM)
        y0 = tok0 * jax.lax.rsqrt(pwr) + noise_ref[0]                         # (1, NSYM)
        d0 = jnp.dot(y0, c2dw_ref[...], preferred_element_type=jnp.float32) + c2db_ref[...]
        logits = jnp.dot(d0, hw_ref[...], preferred_element_type=jnp.float32) + hb_ref[...]
        o_ref[...] = logits.reshape(1, 1, NUM_CLASSES)


# ------------------------------- wrapper ---------------------------------------
def pallas_forward(patches, params, noise_rot):
    stk = params['blocks']
    dspec = lambda r, c: pl.BlockSpec((1, r, c), lambda b, d: (d, 0, 0))   # per-depth
    bspec = lambda r, c: pl.BlockSpec((1, r, c), lambda b, d: (b, 0, 0))   # per-batch
    cspec = lambda r, c: pl.BlockSpec((r, c), lambda b, d: (0, 0))         # shared

    grid_spec = pltpu.PrefetchScalarGridSpec(
        num_scalar_prefetch=0,
        grid=(B, DEPTH),
        in_specs=[
            bspec(NPATCH, CPP),                           # patches (read at d==0)
            cspec(CPP, D), cspec(1, D),                   # patch_embed w, b
            cspec(1, D), cspec(NTOK, D),                  # cls token, pos embed
            dspec(1, D), dspec(1, D),                     # ln1 g, b
            dspec(D, 3 * D), dspec(1, 3 * D),             # fused qkv w, b
            dspec(D, D), dspec(1, D),                     # attn proj w, b
            dspec(1, D), dspec(1, D),                     # ln2 g, b
            dspec(D, MLP), dspec(1, MLP),                 # fc1 w, b
            dspec(MLP, D), dspec(1, D),                   # fc2 w, b
            cspec(1, D), cspec(1, D),                     # final norm g, b
            cspec(D, NSYM), cspec(1, NSYM),               # encoder_to_channel
            bspec(1, NSYM),                               # pre-rotated channel noise
            cspec(NSYM, D), cspec(1, D),                  # channel_to_decoder
            cspec(D, NUM_CLASSES), cspec(1, NUM_CLASSES),  # head
        ],
        out_specs=pl.BlockSpec((1, 1, NUM_CLASSES), lambda b, d: (b, 0, 0)),
        scratch_shapes=[pltpu.VMEM((NTOK, D), jnp.float32)],   # activation carry
    )
    out = pl.pallas_call(
        fused_kernel,
        grid_spec=grid_spec,
        out_shape=jax.ShapeDtypeStruct((B, 1, NUM_CLASSES), jnp.float32),
        compiler_params=pltpu.CompilerParams(
            dimension_semantics=("parallel", "arbitrary"),
            vmem_limit_bytes=32 * 1024 * 1024),
    )(patches,
      params['pe_w'], params['pe_b'],
      params['cls_token'], params['pos_embed'],
      stk['ln1_g'], stk['ln1_b'],
      stk['qkv_w'], stk['qkv_b'],
      stk['proj_w'], stk['proj_b'],
      stk['ln2_g'], stk['ln2_b'],
      stk['fc1_w'], stk['fc1_b'],
      stk['fc2_w'], stk['fc2_b'],
      params['norm_g'], params['norm_b'],
      params['enc2ch_w'], params['enc2ch_b'],
      noise_rot,
      params['ch2dec_w'], params['ch2dec_b'],
      params['head_w'], params['head_b'])
    return out.reshape(B, NUM_CLASSES)


# ------------------------------ host-side glue ---------------------------------
def extract_patches(img, patch):
    # (B, C, H, W) NCHW -> (B, num_patches, C*P*P), (C, ph, pw) per-patch ordering
    Bm, Cm, H, W = img.shape
    hn, wn = H // patch, W // patch
    x = img.reshape(Bm, Cm, hn, patch, wn, patch)
    x = jnp.transpose(x, (0, 2, 4, 1, 3, 5))
    return x.reshape(Bm, hn * wn, Cm * patch * patch)


def init_params(key):
    keys = iter(jax.random.split(key, 64))
    w = lambda shape: (0.02 * jax.random.normal(next(keys), shape)).astype(jnp.float32)
    zeros = lambda shape: jnp.zeros(shape, jnp.float32)
    ones = lambda shape: jnp.ones(shape, jnp.float32)
    # TODO(synk): real module loads pretrained timm ViT-B/16 weights; synthetic init here.
    params = {
        'pe_w': w((CPP, D)), 'pe_b': zeros((1, D)),            # patch_embed Conv2d (reshaped)
        'cls_token': w((1, D)),
        'pos_embed': w((NTOK, D)),
        'norm_g': ones((1, D)), 'norm_b': zeros((1, D)),       # self.net.norm
        'enc2ch_w': w((D, NSYM)), 'enc2ch_b': zeros((1, NSYM)),
        'ch2dec_w': w((NSYM, D)), 'ch2dec_b': zeros((1, D)),
        'head_w': w((D, NUM_CLASSES)), 'head_b': zeros((1, NUM_CLASSES)),
    }
    blocks = []
    for _ in range(DEPTH):
        blocks.append({
            'ln1_g': ones((1, D)), 'ln1_b': zeros((1, D)),
            'qkv_w': w((D, 3 * D)), 'qkv_b': zeros((1, 3 * D)),
            'proj_w': w((D, D)), 'proj_b': zeros((1, D)),
            'ln2_g': ones((1, D)), 'ln2_b': zeros((1, D)),
            'fc1_w': w((D, MLP)), 'fc1_b': zeros((1, MLP)),
            'fc2_w': w((MLP, D)), 'fc2_b': zeros((1, D)),
        })
    stk = {}
    for k in blocks[0]:
        arr = jnp.stack([blk[k] for blk in blocks], axis=0)     # depth-stacked
        if k in ('qkv_w', 'proj_w', 'fc1_w', 'fc2_w'):
            arr = arr.astype(WDT)                               # bf16 storage
        stk[k] = arr
    params['blocks'] = stk
    return params


def tdeepsc_imgc_forward(params, img, chan_key, test_snr=12.0):
    patches = extract_patches(img, P)                           # (B, NPATCH, CPP)

    # Rayleigh channel randomness (host-side, tiny). Reference channel:
    #   y = (x @ H) + n ; perfect estimation: y @ H^-1 = x + n @ H^-1
    # with H = [[hr, -hi], [hi, hr]] (row-vector re/im convention). Pre-rotate the
    # noise by H^-1 so the in-kernel channel is a lane-dense add. Only token 0 feeds
    # the head, so noise is drawn just for its NSYM/2 complex symbols.
    noise_std = float(10.0 ** (-test_snr / 20.0))
    k_h, k_n = jax.random.split(chan_key)
    h_ri = jax.random.normal(k_h, (2,), jnp.float32) * math.sqrt(0.5)
    hr, hi = h_ri[0], h_ri[1]
    det = hr * hr + hi * hi
    hinv = jnp.stack([jnp.stack([hr, hi]), jnp.stack([-hi, hr])]) / det      # H^{-1}
    noise = noise_std * jax.random.normal(k_n, (B, NSYM // 2, 2), jnp.float32)
    noise_rot = jnp.matmul(noise, hinv).reshape(B, 1, NSYM)

    return pallas_forward(patches, params, noise_rot)           # (B, NUM_CLASSES)


if __name__ == "__main__":
    root = jax.random.PRNGKey(0)
    k_img, k_par, k_chan = jax.random.split(root, 3)
    img = jax.random.normal(k_img, (B, C, IMG, IMG), jnp.float32)
    params = init_params(k_par)
    logits = tdeepsc_imgc_forward(params, img, k_chan, test_snr=12.0)
    logits = jax.block_until_ready(logits)
    assert logits.shape == (B, NUM_CLASSES), logits.shape
    assert bool(jnp.all(jnp.isfinite(logits)))
    print("KERNEL_OK")
</pallas_src>

<mosaic_0001>
module attributes {stable_mosaic.version = 11 : i64} {
  func.func @fused_kernel(%arg0: i32, %arg1: i32, %arg2: memref<1x4x768xf32, #tpu.memory_space<vmem>>, %arg3: memref<768x32xf32, #tpu.memory_space<vmem>>, %arg4: memref<1x32xf32, #tpu.memory_space<vmem>>, %arg5: memref<1x32xf32, #tpu.memory_space<vmem>>, %arg6: memref<5x32xf32, #tpu.memory_space<vmem>>, %arg7: memref<1x1x32xf32, #tpu.memory_space<vmem>>, %arg8: memref<1x1x32xf32, #tpu.memory_space<vmem>>, %arg9: memref<1x32x96xbf16, #tpu.memory_space<vmem>>, %arg10: memref<1x1x96xf32, #tpu.memory_space<vmem>>, %arg11: memref<1x32x32xbf16, #tpu.memory_space<vmem>>, %arg12: memref<1x1x32xf32, #tpu.memory_space<vmem>>, %arg13: memref<1x1x32xf32, #tpu.memory_space<vmem>>, %arg14: memref<1x1x32xf32, #tpu.memory_space<vmem>>, %arg15: memref<1x32x128xbf16, #tpu.memory_space<vmem>>, %arg16: memref<1x1x128xf32, #tpu.memory_space<vmem>>, %arg17: memref<1x128x32xbf16, #tpu.memory_space<vmem>>, %arg18: memref<1x1x32xf32, #tpu.memory_space<vmem>>, %arg19: memref<1x32xf32, #tpu.memory_space<vmem>>, %arg20: memref<1x32xf32, #tpu.memory_space<vmem>>, %arg21: memref<32x16xf32, #tpu.memory_space<vmem>>, %arg22: memref<1x16xf32, #tpu.memory_space<vmem>>, %arg23: memref<1x1x16xf32, #tpu.memory_space<vmem>>, %arg24: memref<16x32xf32, #tpu.memory_space<vmem>>, %arg25: memref<1x32xf32, #tpu.memory_space<vmem>>, %arg26: memref<32x10xf32, #tpu.memory_space<vmem>>, %arg27: memref<1x10xf32, #tpu.memory_space<vmem>>, %arg28: memref<1x1x10xf32, #tpu.memory_space<vmem>>, %arg29: memref<5x32xf32, #tpu.memory_space<vmem>>) attributes {dimension_semantics = [#tpu.dimension_semantics<parallel>, #tpu.dimension_semantics<arbitrary>], iteration_bounds = array<i64: 2, 2>, scalar_prefetch = 0 : i64, scratch_operands = 1 : i64, tpu.core_type = #tpu.core_type<tc>, window_params = [{transform_indices = @transform_0, window_bounds = array<i64: 1, 4, 768>}, {pipeline_mode = #tpu.pipeline_mode<synchronous>, transform_indices = @transform_1, window_bounds = array<i64: 768, 32>}, {pipeline_mode = #tpu.pipeline_mode<synchronous>, transform_indices = @transform_2, window_bounds = array<i64: 1, 32>}, {pipeline_mode = #tpu.pipeline_mode<synchronous>, transform_indices = @transform_3, window_bounds = array<i64: 1, 32>}, {pipeline_mode = #tpu.pipeline_mode<synchronous>, transform_indices = @transform_4, window_bounds = array<i64: 5, 32>}, {transform_indices = @transform_5, window_bounds = array<i64: 1, 1, 32>}, {transform_indices = @transform_6, window_bounds = array<i64: 1, 1, 32>}, {transform_indices = @transform_7, window_bounds = array<i64: 1, 32, 96>}, {transform_indices = @transform_8, window_bounds = array<i64: 1, 1, 96>}, {transform_indices = @transform_9, window_bounds = array<i64: 1, 32, 32>}, {transform_indices = @transform_10, window_bounds = array<i64: 1, 1, 32>}, {transform_indices = @transform_11, window_bounds = array<i64: 1, 1, 32>}, {transform_indices = @transform_12, window_bounds = array<i64: 1, 1, 32>}, {transform_indices = @transform_13, window_bounds = array<i64: 1, 32, 128>}, {transform_indices = @transform_14, window_bounds = array<i64: 1, 1, 128>}, {transform_indices = @transform_15, window_bounds = array<i64: 1, 128, 32>}, {transform_indices = @transform_16, window_bounds = array<i64: 1, 1, 32>}, {pipeline_mode = #tpu.pipeline_mode<synchronous>, transform_indices = @transform_17, window_bounds = array<i64: 1, 32>}, {pipeline_mode = #tpu.pipeline_mode<synchronous>, transform_indices = @transform_18, window_bounds = array<i64: 1, 32>}, {pipeline_mode = #tpu.pipeline_mode<synchronous>, transform_indices = @transform_19, window_bounds = array<i64: 32, 16>}, {pipeline_mode = #tpu.pipeline_mode<synchronous>, transform_indices = @transform_20, window_bounds = array<i64: 1, 16>}, {transform_indices = @transform_21, window_bounds = array<i64: 1, 1, 16>}, {pipeline_mode = #tpu.pipeline_mode<synchronous>, transform_indices = @transform_22, window_bounds = array<i64: 16, 32>}, {pipeline_mode = #tpu.pipeline_mode<synchronous>, transform_indices = @transform_23, window_bounds = array<i64: 1, 32>}, {pipeline_mode = #tpu.pipeline_mode<synchronous>, transform_indices = @transform_24, window_bounds = array<i64: 32, 10>}, {pipeline_mode = #tpu.pipeline_mode<synchronous>, transform_indices = @transform_25, window_bounds = array<i64: 1, 10>}, {transform_indices = @transform_26, window_bounds = array<i64: 1, 1, 10>}]} {
    %c0_i32 = arith.constant 0 : i32
    %0 = arith.cmpi eq, %arg1, %c0_i32 : i32
    %1 = arith.extui %0 : i1 to i32
    %c0_i32_0 = arith.constant 0 : i32
    %2 = arith.cmpi ne, %1, %c0_i32_0 : i32
    scf.if %2 {
      %c0_63 = arith.constant 0 : index
      %c0_64 = arith.constant 0 : index
      %c0_65 = arith.constant 0 : index
      %161 = vector.load %arg2[%c0_63, %c0_64, %c0_65] : memref<1x4x768xf32, #tpu.memory_space<vmem>>, vector<1x4x768xf32>
      %162 = vector.shape_cast %161 : vector<1x4x768xf32> to vector<4x768xf32>
      %c0_66 = arith.constant 0 : index
      %c0_67 = arith.constant 0 : index
      %163 = vector.load %arg3[%c0_66, %c0_67] : memref<768x32xf32, #tpu.memory_space<vmem>>, vector<768x32xf32>
      %cst_68 = arith.constant dense<0.000000e+00> : vector<4x32xf32>
      %164 = tpu.matmul %162, %163, %cst_68 {dimension_numbers = #tpu.dot_dimension_numbers<[1], [0], [0], [1], [0, 0, 1, 1], [], []>} : vector<4x768xf32>, vector<768x32xf32>, vector<4x32xf32> -> vector<4x32xf32>
      %c0_69 = arith.constant 0 : index
      %c0_70 = arith.constant 0 : index
      %165 = vector.load %arg4[%c0_69, %c0_70] : memref<1x32xf32, #tpu.memory_space<vmem>>, vector<1x32xf32>
      %166 = vector.broadcast %165 : vector<1x32xf32> to vector<4x32xf32>
      %167 = arith.addf %164, %166 : vector<4x32xf32>
      %c0_71 = arith.constant 0 : index
      %c0_72 = arith.constant 0 : index
      %168 = vector.load %arg5[%c0_71, %c0_72] : memref<1x32xf32, #tpu.memory_space<vmem>>, vector<1x32xf32>
      %c0_73 = arith.constant 0 : index
      %c0_74 = arith.constant 0 : index
      %169 = vector.load %arg6[%c0_73, %c0_74] : memref<5x32xf32, #tpu.memory_space<vmem>>, vector<1x32xf32>
      %170 = arith.addf %168, %169 : vector<1x32xf32>
      %c0_75 = arith.constant 0 : index
      %c0_76 = arith.constant 0 : index
      %171 = vector.load %arg29[%c0_75, %c0_76] : memref<5x32xf32, #tpu.memory_space<vmem>>, vector<1x32xf32>
      tpu.vector_store %arg29[%c0_75, %c0_76], %170 {strides = array<i32>} : memref<5x32xf32, #tpu.memory_space<vmem>>, vector<1x32xf32>,
      %c1 = arith.constant 1 : index
      %c0_77 = arith.constant 0 : index
      %172 = vector.load %arg6[%c1, %c0_77] : memref<5x32xf32, #tpu.memory_space<vmem>>, vector<4x32xf32>
      %173 = arith.addf %167, %172 : vector<4x32xf32>
      %c1_78 = arith.constant 1 : index
      %c0_79 = arith.constant 0 : index
      %174 = vector.load %arg29[%c1_78, %c0_79] : memref<5x32xf32, #tpu.memory_space<vmem>>, vector<4x32xf32>
      tpu.vector_store %arg29[%c1_78, %c0_79], %173 {strides = array<i32>} : memref<5x32xf32, #tpu.memory_space<vmem>>, vector<4x32xf32>,
    } else {
    }
    %c0 = arith.constant 0 : index
    %c0_1 = arith.constant 0 : index
    %3 = vector.load %arg29[%c0, %c0_1] : memref<5x32xf32, #tpu.memory_space<vmem>>, vector<5x32xf32>
    %c0_2 = arith.constant 0 : index
    %c0_3 = arith.constant 0 : index
    %c0_4 = arith.constant 0 : index
    %4 = vector.load %arg7[%c0_2, %c0_3, %c0_4] : memref<1x1x32xf32, #tpu.memory_space<vmem>>, vector<1x1x32xf32>
    %5 = vector.shape_cast %4 : vector<1x1x32xf32> to vector<1x32xf32>
    %c0_5 = arith.constant 0 : index
    %c0_6 = arith.constant 0 : index
    %c0_7 = arith.constant 0 : index
    %6 = vector.load %arg8[%c0_5, %c0_6, %c0_7] : memref<1x1x32xf32, #tpu.memory_space<vmem>>, vector<1x1x32xf32>
    %7 = vector.shape_cast %6 : vector<1x1x32xf32> to vector<1x32xf32>
    %cst = arith.constant dense<0.000000e+00> : vector<5xf32>
    %8 = vector.multi_reduction <add>, %3, %cst [1] : vector<5x32xf32> to vector<5xf32>
    %9 = vector.shape_cast %8 : vector<5xf32> to vector<5x1xf32>
    %cst_8 = arith.constant 3.200000e+01 : f32
    %10 = vector.broadcast %cst_8 : f32 to vector<5x1xf32>
    %11 = arith.divf %9, %10 : vector<5x1xf32>
    %12 = vector.broadcast %11 : vector<5x1xf32> to vector<5x32xf32>
    %13 = arith.subf %3, %12 : vector<5x32xf32>
    %14 = vector.broadcast %11 : vector<5x1xf32> to vector<5x32xf32>
    %15 = arith.subf %3, %14 : vector<5x32xf32>
    %16 = arith.mulf %13, %15 : vector<5x32xf32>
    %cst_9 = arith.constant dense<0.000000e+00> : vector<5xf32>
    %17 = vector.multi_reduction <add>, %16, %cst_9 [1] : vector<5x32xf32> to vector<5xf32>
    %18 = vector.shape_cast %17 : vector<5xf32> to vector<5x1xf32>
    %cst_10 = arith.constant 3.200000e+01 : f32
    %19 = vector.broadcast %cst_10 : f32 to vector<5x1xf32>
    %20 = arith.divf %18, %19 : vector<5x1xf32>
    %21 = vector.broadcast %11 : vector<5x1xf32> to vector<5x32xf32>
    %22 = arith.subf %3, %21 : vector<5x32xf32>
    %cst_11 = arith.constant 9.99999997E-7 : f32
    %23 = vector.broadcast %cst_11 : f32 to vector<5x1xf32>
    %24 = arith.addf %20, %23 : vector<5x1xf32>
    %25 = math.rsqrt %24 : vector<5x1xf32>
    %26 = vector.broadcast %25 : vector<5x1xf32> to vector<5x32xf32>
    %27 = arith.mulf %22, %26 : vector<5x32xf32>
    %28 = vector.broadcast %5 : vector<1x32xf32> to vector<5x32xf32>
    %29 = arith.mulf %27, %28 : vector<5x32xf32>
    %30 = vector.broadcast %7 : vector<1x32xf32> to vector<5x32xf32>
    %31 = arith.addf %29, %30 : vector<5x32xf32>
    %32 = arith.truncf %31 : vector<5x32xf32> to vector<5x32xbf16>
    %c0_12 = arith.constant 0 : index
    %c0_13 = arith.constant 0 : index
    %c0_14 = arith.constant 0 : index
    %33 = vector.load %arg9[%c0_12, %c0_13, %c0_14] : memref<1x32x96xbf16, #tpu.memory_space<vmem>>, vector<1x32x96xbf16>
    %34 = vector.shape_cast %33 : vector<1x32x96xbf16> to vector<32x96xbf16>
    %cst_15 = arith.constant dense<0.000000e+00> : vector<5x96xf32>
    %35 = tpu.matmul %32, %34, %cst_15 {dimension_numbers = #tpu.dot_dimension_numbers<[1], [0], [0], [1], [0, 0, 1, 1], [], []>} : vector<5x32xbf16>, vector<32x96xbf16>, vector<5x96xf32> -> vector<5x96xf32>
    %c0_16 = arith.constant 0 : index
    %c0_17 = arith.constant 0 : index
    %c0_18 = arith.constant 0 : index
    %36 = vector.load %arg10[%c0_16, %c0_17, %c0_18] : memref<1x1x96xf32, #tpu.memory_space<vmem>>, vector<1x1x96xf32>
    %37 = vector.shape_cast %36 : vector<1x1x96xf32> to vector<1x96xf32>
    %38 = vector.broadcast %37 : vector<1x96xf32> to vector<5x96xf32>
    %39 = arith.addf %35, %38 : vector<5x96xf32>
    %40 = vector.extract_strided_slice %39 {offsets = [0, 0], sizes = [5, 8], strides = [1, 1]} : vector<5x96xf32> to vector<5x8xf32>
    %41 = vector.extract_strided_slice %39 {offsets = [0, 8], sizes = [5, 8], strides = [1, 1]} : vector<5x96xf32> to vector<5x8xf32>
    %42 = vector.extract_strided_slice %39 {offsets = [0, 16], sizes = [5, 8], strides = [1, 1]} : vector<5x96xf32> to vector<5x8xf32>
    %43 = vector.extract_strided_slice %39 {offsets = [0, 24], sizes = [5, 8], strides = [1, 1]} : vector<5x96xf32> to vector<5x8xf32>
    %44 = vector.shape_cast %40 : vector<5x8xf32> to vector<1x5x8xf32>
    %45 = vector.shape_cast %41 : vector<5x8xf32> to vector<1x5x8xf32>
    %46 = vector.shape_cast %42 : vector<5x8xf32> to vector<1x5x8xf32>
    %47 = vector.shape_cast %43 : vector<5x8xf32> to vector<1x5x8xf32>
    %48 = tpu.concatenate %44, %45, %46, %47 in 0 : vector<1x5x8xf32>, vector<1x5x8xf32>, vector<1x5x8xf32>, vector<1x5x8xf32> -> vector<4x5x8xf32>
    %49 = vector.extract_strided_slice %39 {offsets = [0, 32], sizes = [5, 8], strides = [1, 1]} : vector<5x96xf32> to vector<5x8xf32>
    %50 = vector.extract_strided_slice %39 {offsets = [0, 40], sizes = [5, 8], strides = [1, 1]} : vector<5x96xf32> to vector<5x8xf32>
    %51 = vector.extract_strided_slice %39 {offsets = [0, 48], sizes = [5, 8], strides = [1, 1]} : vector<5x96xf32> to vector<5x8xf32>
    %52 = vector.extract_strided_slice %39 {offsets = [0, 56], sizes = [5, 8], strides = [1, 1]} : vector<5x96xf32> to vector<5x8xf32>
    %53 = vector.shape_cast %49 : vector<5x8xf32> to vector<1x5x8xf32>
    %54 = vector.shape_cast %50 : vector<5x8xf32> to vector<1x5x8xf32>
    %55 = vector.shape_cast %51 : vector<5x8xf32> to vector<1x5x8xf32>
    %56 = vector.shape_cast %52 : vector<5x8xf32> to vector<1x5x8xf32>
    %57 = tpu.concatenate %53, %54, %55, %56 in 0 : vector<1x5x8xf32>, vector<1x5x8xf32>, vector<1x5x8xf32>, vector<1x5x8xf32> -> vector<4x5x8xf32>
    %58 = vector.extract_strided_slice %39 {offsets = [0, 64], sizes = [5, 8], strides = [1, 1]} : vector<5x96xf32> to vector<5x8xf32>
    %59 = vector.extract_strided_slice %39 {offsets = [0, 72], sizes = [5, 8], strides = [1, 1]} : vector<5x96xf32> to vector<5x8xf32>
    %60 = vector.extract_strided_slice %39 {offsets = [0, 80], sizes = [5, 8], strides = [1, 1]} : vector<5x96xf32> to vector<5x8xf32>
    %61 = vector.extract_strided_slice %39 {offsets = [0, 88], sizes = [5, 8], strides = [1, 1]} : vector<5x96xf32> to vector<5x8xf32>
    %62 = vector.shape_cast %58 : vector<5x8xf32> to vector<1x5x8xf32>
    %63 = vector.shape_cast %59 : vector<5x8xf32> to vector<1x5x8xf32>
    %64 = vector.shape_cast %60 : vector<5x8xf32> to vector<1x5x8xf32>
    %65 = vector.shape_cast %61 : vector<5x8xf32> to vector<1x5x8xf32>
    %66 = tpu.concatenate %62, %63, %64, %65 in 0 : vector<1x5x8xf32>, vector<1x5x8xf32>, vector<1x5x8xf32>, vector<1x5x8xf32> -> vector<4x5x8xf32>
    %cst_19 = arith.constant 0.353553385 : f32
    %67 = vector.broadcast %cst_19 : f32 to vector<4x5x8xf32>
    %68 = arith.mulf %48, %67 : vector<4x5x8xf32>
    "tpu.trace_start"() <{level = 10 : i32, message = "hqe,hke->hqk"}> : () -> ()
    %cst_20 = arith.constant dense<0.000000e+00> : vector<4x5x5xf32>
    %69 = tpu.matmul %68, %57, %cst_20 {dimension_numbers = #tpu.dot_dimension_numbers<[2], [2], [1], [1], [0, 0, 0, 1, 1, 1], [0], [0]>} : vector<4x5x8xf32>, vector<4x5x8xf32>, vector<4x5x5xf32> -> vector<4x5x5xf32>
    "tpu.trace_stop"() : () -> ()
    %cst_21 = arith.constant dense<0xFF800000> : vector<4x5xf32>
    %70 = vector.multi_reduction <maximumf>, %69, %cst_21 [2] : vector<4x5x5xf32> to vector<4x5xf32>
    %71 = vector.shape_cast %70 : vector<4x5xf32> to vector<4x5x1xf32>
    %72 = vector.broadcast %71 : vector<4x5x1xf32> to vector<4x5x5xf32>
    %73 = arith.subf %69, %72 : vector<4x5x5xf32>
    %74 = math.exp %73 : vector<4x5x5xf32>
    %cst_22 = arith.constant dense<0.000000e+00> : vector<4x5xf32>
    %75 = vector.multi_reduction <add>, %74, %cst_22 [2] : vector<4x5x5xf32> to vector<4x5xf32>
    %76 = vector.shape_cast %75 : vector<4x5xf32> to vector<4x5x1xf32>
    %77 = tpu.reciprocal %76 {approx = true} : vector<4x5x1xf32> -> vector<4x5x1xf32>
    %78 = vector.broadcast %77 : vector<4x5x1xf32> to vector<4x5x5xf32>
    %79 = arith.mulf %74, %78 : vector<4x5x5xf32>
    "tpu.trace_start"() <{level = 10 : i32, message = "hqk,hke->hqe"}> : () -> ()
    %cst_23 = arith.constant dense<0.000000e+00> : vector<4x5x8xf32>
    %80 = tpu.matmul %79, %66, %cst_23 {dimension_numbers = #tpu.dot_dimension_numbers<[2], [1], [1], [2], [0, 0, 0, 1, 1, 2], [0], [0]>} : vector<4x5x5xf32>, vector<4x5x8xf32>, vector<4x5x8xf32> -> vector<4x5x8xf32>
    "tpu.trace_stop"() : () -> ()
    %81 = vector.extract_strided_slice %80 {offsets = [0, 0, 0], sizes = [1, 5, 8], strides = [1, 1, 1]} : vector<4x5x8xf32> to vector<1x5x8xf32>
    %82 = vector.shape_cast %81 : vector<1x5x8xf32> to vector<5x8xf32>
    %83 = vector.extract_strided_slice %80 {offsets = [1, 0, 0], sizes = [1, 5, 8], strides = [1, 1, 1]} : vector<4x5x8xf32> to vector<1x5x8xf32>
    %84 = vector.shape_cast %83 : vector<1x5x8xf32> to vector<5x8xf32>
    %85 = vector.extract_strided_slice %80 {offsets = [2, 0, 0], sizes = [1, 5, 8], strides = [1, 1, 1]} : vector<4x5x8xf32> to vector<1x5x8xf32>
    %86 = vector.shape_cast %85 : vector<1x5x8xf32> to vector<5x8xf32>
    %87 = vector.extract_strided_slice %80 {offsets = [3, 0, 0], sizes = [1, 5, 8], strides = [1, 1, 1]} : vector<4x5x8xf32> to vector<1x5x8xf32>
    %88 = vector.shape_cast %87 : vector<1x5x8xf32> to vector<5x8xf32>
    %89 = tpu.concatenate %82, %84, %86, %88 in 1 : vector<5x8xf32>, vector<5x8xf32>, vector<5x8xf32>, vector<5x8xf32> -> vector<5x32xf32>
    %90 = arith.truncf %89 : vector<5x32xf32> to vector<5x32xbf16>
    %c0_24 = arith.constant 0 : index
    %c0_25 = arith.constant 0 : index
    %c0_26 = arith.constant 0 : index
    %91 = vector.load %arg11[%c0_24, %c0_25, %c0_26] : memref<1x32x32xbf16, #tpu.memory_space<vmem>>, vector<1x32x32xbf16>
    %92 = vector.shape_cast %91 : vector<1x32x32xbf16> to vector<32x32xbf16>
    %cst_27 = arith.constant dense<0.000000e+00> : vector<5x32xf32>
    %93 = tpu.matmul %90, %92, %cst_27 {dimension_numbers = #tpu.dot_dimension_numbers<[1], [0], [0], [1], [0, 0, 1, 1], [], []>} : vector<5x32xbf16>, vector<32x32xbf16>, vector<5x32xf32> -> vector<5x32xf32>
    %c0_28 = arith.constant 0 : index
    %c0_29 = arith.constant 0 : index
    %c0_30 = arith.constant 0 : index
    %94 = vector.load %arg12[%c0_28, %c0_29, %c0_30] : memref<1x1x32xf32, #tpu.memory_space<vmem>>, vector<1x1x32xf32>
    %95 = vector.shape_cast %94 : vector<1x1x32xf32> to vector<1x32xf32>
    %96 = vector.broadcast %95 : vector<1x32xf32> to vector<5x32xf32>
    %97 = arith.addf %93, %96 : vector<5x32xf32>
    %98 = arith.addf %3, %97 : vector<5x32xf32>
    %c0_31 = arith.constant 0 : index
    %c0_32 = arith.constant 0 : index
    %c0_33 = arith.constant 0 : index
    %99 = vector.load %arg13[%c0_31, %c0_32, %c0_33] : memref<1x1x32xf32, #tpu.memory_space<vmem>>, vector<1x1x32xf32>
    %100 = vector.shape_cast %99 : vector<1x1x32xf32> to vector<1x32xf32>
    %c0_34 = arith.constant 0 : index
    %c0_35 = arith.constant 0 : index
    %c0_36 = arith.constant 0 : index
    %101 = vector.load %arg14[%c0_34, %c0_35, %c0_36] : memref<1x1x32xf32, #tpu.memory_space<vmem>>, vector<1x1x32xf32>
    %102 = vector.shape_cast %101 : vector<1x1x32xf32> to vector<1x32xf32>
    %cst_37 = arith.constant dense<0.000000e+00> : vector<5xf32>
    %103 = vector.multi_reduction <add>, %98, %cst_37 [1] : vector<5x32xf32> to vector<5xf32>
    %104 = vector.shape_cast %103 : vector<5xf32> to vector<5x1xf32>
    %cst_38 = arith.constant 3.200000e+01 : f32
    %105 = vector.broadcast %cst_38 : f32 to vector<5x1xf32>
    %106 = arith.divf %104, %105 : vector<5x1xf32>
    %107 = vector.broadcast %106 : vector<5x1xf32> to vector<5x32xf32>
    %108 = arith.subf %98, %107 : vector<5x32xf32>
    %109 = vector.broadcast %106 : vector<5x1xf32> to vector<5x32xf32>
    %110 = arith.subf %98, %109 : vector<5x32xf32>
    %111 = arith.mulf %108, %110 : vector<5x32xf32>
    %cst_39 = arith.constant dense<0.000000e+00> : vector<5xf32>
    %112 = vector.multi_reduction <add>, %111, %cst_39 [1] : vector<5x32xf32> to vector<5xf32>
    %113 = vector.shape_cast %112 : vector<5xf32> to vector<5x1xf32>
    %cst_40 = arith.constant 3.200000e+01 : f32
    %114 = vector.broadcast %cst_40 : f32 to vector<5x1xf32>
    %115 = arith.divf %113, %114 : vector<5x1xf32>
    %116 = vector.broadcast %106 : vector<5x1xf32> to vector<5x32xf32>
    %117 = arith.subf %98, %116 : vector<5x32xf32>
    %cst_41 = arith.constant 9.99999997E-7 : f32
    %118 = vector.broadcast %cst_41 : f32 to vector<5x1xf32>
    %119 = arith.addf %115, %118 : vector<5x1xf32>
    %120 = math.rsqrt %119 : vector<5x1xf32>
    %121 = vector.broadcast %120 : vector<5x1xf32> to vector<5x32xf32>
    %122 = arith.mulf %117, %121 : vector<5x32xf32>
    %123 = vector.broadcast %100 : vector<1x32xf32> to vector<5x32xf32>
    %124 = arith.mulf %122, %123 : vector<5x32xf32>
    %125 = vector.broadcast %102 : vector<1x32xf32> to vector<5x32xf32>
    %126 = arith.addf %124, %125 : vector<5x32xf32>
    %127 = arith.truncf %126 : vector<5x32xf32> to vector<5x32xbf16>
    %c0_42 = arith.constant 0 : index
    %c0_43 = arith.constant 0 : index
    %c0_44 = arith.constant 0 : index
    %128 = vector.load %arg15[%c0_42, %c0_43, %c0_44] : memref<1x32x128xbf16, #tpu.memory_space<vmem>>, vector<1x32x128xbf16>
    %129 = vector.shape_cast %128 : vector<1x32x128xbf16> to vector<32x128xbf16>
    %cst_45 = arith.constant dense<0.000000e+00> : vector<5x128xf32>
    %130 = tpu.matmul %127, %129, %cst_45 {dimension_numbers = #tpu.dot_dimension_numbers<[1], [0], [0], [1], [0, 0, 1, 1], [], []>} : vector<5x32xbf16>, vector<32x128xbf16>, vector<5x128xf32> -> vector<5x128xf32>
    %c0_46 = arith.constant 0 : index
    %c0_47 = arith.constant 0 : index
    %c0_48 = arith.constant 0 : index
    %131 = vector.load %arg16[%c0_46, %c0_47, %c0_48] : memref<1x1x128xf32, #tpu.memory_space<vmem>>, vector<1x1x128xf32>
    %132 = vector.shape_cast %131 : vector<1x1x128xf32> to vector<1x128xf32>
    %133 = vector.broadcast %132 : vector<1x128xf32> to vector<5x128xf32>
    %134 = arith.addf %130, %133 : vector<5x128xf32>
    %cst_49 = arith.constant 5.000000e-01 : f32
    %135 = vector.broadcast %cst_49 : f32 to vector<5x128xf32>
    %136 = arith.mulf %135, %134 : vector<5x128xf32>
    %cst_50 = arith.constant 4.471500e-02 : f32
    %137 = vector.broadcast %cst_50 : f32 to vector<5x128xf32>
    %138 = arith.mulf %137, %134 : vector<5x128xf32>
    %139 = arith.mulf %138, %134 : vector<5x128xf32>
    %140 = arith.mulf %139, %134 : vector<5x128xf32>
    %141 = arith.addf %134, %140 : vector<5x128xf32>
    %cst_51 = arith.constant 0.797884583 : f32
    %142 = vector.broadcast %cst_51 : f32 to vector<5x128xf32>
    %143 = arith.mulf %142, %141 : vector<5x128xf32>
    %144 = math.tanh %143 : vector<5x128xf32>
    %cst_52 = arith.constant 1.000000e+00 : f32
    %145 = vector.broadcast %cst_52 : f32 to vector<5x128xf32>
    %146 = arith.addf %145, %144 : vector<5x128xf32>
    %147 = arith.mulf %136, %146 : vector<5x128xf32>
    %148 = arith.truncf %147 : vector<5x128xf32> to vector<5x128xbf16>
    %c0_53 = arith.constant 0 : index
    %c0_54 = arith.constant 0 : index
    %c0_55 = arith.constant 0 : index
    %149 = vector.load %arg17[%c0_53, %c0_54, %c0_55] : memref<1x128x32xbf16, #tpu.memory_space<vmem>>, vector<1x128x32xbf16>
    %150 = vector.shape_cast %149 : vector<1x128x32xbf16> to vector<128x32xbf16>
    %cst_56 = arith.constant dense<0.000000e+00> : vector<5x32xf32>
    %151 = tpu.matmul %148, %150, %cst_56 {dimension_numbers = #tpu.dot_dimension_numbers<[1], [0], [0], [1], [0, 0, 1, 1], [], []>} : vector<5x128xbf16>, vector<128x32xbf16>, vector<5x32xf32> -> vector<5x32xf32>
    %c0_57 = arith.constant 0 : index
    %c0_58 = arith.constant 0 : index
    %c0_59 = arith.constant 0 : index
    %152 = vector.load %arg18[%c0_57, %c0_58, %c0_59] : memref<1x1x32xf32, #tpu.memory_space<vmem>>, vector<1x1x32xf32>
    %153 = vector.shape_cast %152 : vector<1x1x32xf32> to vector<1x32xf32>
    %154 = vector.broadcast %153 : vector<1x32xf32> to vector<5x32xf32>
    %155 = arith.addf %151, %154 : vector<5x32xf32>
    %156 = arith.addf %98, %155 : vector<5x32xf32>
    %c0_60 = arith.constant 0 : index
    %c0_61 = arith.constant 0 : index
    %157 = vector.load %arg29[%c0_60, %c0_61] : memref<5x32xf32, #tpu.memory_space<vmem>>, vector<5x32xf32>
    tpu.vector_store %arg29[%c0_60, %c0_61], %156 {strides = array<i32>} : memref<5x32xf32, #tpu.memory_space<vmem>>, vector<5x32xf32>,
    %c1_i32 = arith.constant 1 : i32
    %158 = arith.cmpi eq, %arg1, %c1_i32 : i32
    %159 = arith.extui %158 : i1 to i32
    %c0_i32_62 = arith.constant 0 : i32
    %160 = arith.cmpi ne, %159, %c0_i32_62 : i32
    scf.if %160 {
      %c0_63 = arith.constant 0 : index
      %c0_64 = arith.constant 0 : index
      %161 = vector.load %arg19[%c0_63, %c0_64] : memref<1x32xf32, #tpu.memory_space<vmem>>, vector<1x32xf32>
      %c0_65 = arith.constant 0 : index
      %c0_66 = arith.constant 0 : index
      %162 = vector.load %arg20[%c0_65, %c0_66] : memref<1x32xf32, #tpu.memory_space<vmem>>, vector<1x32xf32>
      %cst_67 = arith.constant dense<0.000000e+00> : vector<5xf32>
      %163 = vector.multi_reduction <add>, %156, %cst_67 [1] : vector<5x32xf32> to vector<5xf32>
      %164 = vector.shape_cast %163 : vector<5xf32> to vector<5x1xf32>
      %cst_68 = arith.constant 3.200000e+01 : f32
      %165 = vector.broadcast %cst_68 : f32 to vector<5x1xf32>
      %166 = arith.divf %164, %165 : vector<5x1xf32>
      %167 = vector.broadcast %166 : vector<5x1xf32> to vector<5x32xf32>
      %168 = arith.subf %156, %167 : vector<5x32xf32>
      %169 = vector.broadcast %166 : vector<5x1xf32> to vector<5x32xf32>
      %170 = arith.subf %156, %169 : vector<5x32xf32>
      %171 = arith.mulf %168, %170 : vector<5x32xf32>
      %cst_69 = arith.constant dense<0.000000e+00> : vector<5xf32>
      %172 = vector.multi_reduction <add>, %171, %cst_69 [1] : vector<5x32xf32> to vector<5xf32>
      %173 = vector.shape_cast %172 : vector<5xf32> to vector<5x1xf32>
      %cst_70 = arith.constant 3.200000e+01 : f32
      %174 = vector.broadcast %cst_70 : f32 to vector<5x1xf32>
      %175 = arith.divf %173, %174 : vector<5x1xf32>
      %176 = vector.broadcast %166 : vector<5x1xf32> to vector<5x32xf32>
      %177 = arith.subf %156, %176 : vector<5x32xf32>
      %cst_71 = arith.constant 9.99999997E-7 : f32
      %178 = vector.broadcast %cst_71 : f32 to vector<5x1xf32>
      %179 = arith.addf %175, %178 : vector<5x1xf32>
      %180 = math.rsqrt %179 : vector<5x1xf32>
      %181 = vector.broadcast %180 : vector<5x1xf32> to vector<5x32xf32>
      %182 = arith.mulf %177, %181 : vector<5x32xf32>
      %183 = vector.broadcast %161 : vector<1x32xf32> to vector<5x32xf32>
      %184 = arith.mulf %182, %183 : vector<5x32xf32>
      %185 = vector.broadcast %162 : vector<1x32xf32> to vector<5x32xf32>
      %186 = arith.addf %184, %185 : vector<5x32xf32>
      %c0_72 = arith.constant 0 : index
      %c0_73 = arith.constant 0 : index
      %187 = vector.load %arg21[%c0_72, %c0_73] : memref<32x16xf32, #tpu.memory_space<vmem>>, vector<32x16xf32>
      %cst_74 = arith.constant dense<0.000000e+00> : vector<5x16xf32>
      %188 = tpu.matmul %186, %187, %cst_74 {dimension_numbers = #tpu.dot_dimension_numbers<[1], [0], [0], [1], [0, 0, 1, 1], [], []>} : vector<5x32xf32>, vector<32x16xf32>, vector<5x16xf32> -> vector<5x16xf32>
      %c0_75 = arith.constant 0 : index
      %c0_76 = arith.constant 0 : index
      %189 = vector.load %arg22[%c0_75, %c0_76] : memref<1x16xf32, #tpu.memory_space<vmem>>, vector<1x16xf32>
      %190 = vector.broadcast %189 : vector<1x16xf32> to vector<5x16xf32>
      %191 = arith.addf %188, %190 : vector<5x16xf32>
      %192 = arith.mulf %191, %191 : vector<5x16xf32>
      %cst_77 = arith.constant dense<0.000000e+00> : vector<5xf32>
      %193 = vector.multi_reduction <add>, %192, %cst_77 [1] : vector<5x16xf32> to vector<5xf32>
      %194 = vector.shape_cast %193 : vector<5xf32> to vector<5x1xf32>
      %cst_78 = arith.constant dense<0.000000e+00> : vector<1xf32>
      %195 = vector.multi_reduction <add>, %194, %cst_78 [0] : vector<5x1xf32> to vector<1xf32>
      %196 = vector.shape_cast %195 : vector<1xf32> to vector<1x1xf32>
      %cst_79 = arith.constant 2.500000e-02 : f32
      %197 = vector.broadcast %cst_79 : f32 to vector<1x1xf32>
      %198 = arith.mulf %196, %197 : vector<1x1xf32>
      %199 = vector.extract_strided_slice %191 {offsets = [0, 0], sizes = [1, 16], strides = [1, 1]} : vector<5x16xf32> to vector<1x16xf32>
      %200 = math.rsqrt %198 : vector<1x1xf32>
      %201 = vector.broadcast %200 : vector<1x1xf32> to vector<1x16xf32>
      %202 = arith.mulf %199, %201 : vector<1x16xf32>
      %c0_80 = arith.constant 0 : index
      %c0_81 = arith.constant 0 : index
      %c0_82 = arith.constant 0 : index
      %203 = vector.load %arg23[%c0_80, %c0_81, %c0_82] : memref<1x1x16xf32, #tpu.memory_space<vmem>>, vector<1x1x16xf32>
      %204 = vector.shape_cast %203 : vector<1x1x16xf32> to vector<1x16xf32>
      %205 = arith.addf %202, %204 : vector<1x16xf32>
      %c0_83 = arith.constant 0 : index
      %c0_84 = arith.constant 0 : index
      %206 = vector.load %arg24[%c0_83, %c0_84] : memref<16x32xf32, #tpu.memory_space<vmem>>, vector<16x32xf32>
      %cst_85 = arith.constant dense<0.000000e+00> : vector<1x32xf32>
      %207 = tpu.matmul %205, %206, %cst_85 {dimension_numbers = #tpu.dot_dimension_numbers<[1], [0], [0], [1], [0, 0, 1, 1], [], []>} : vector<1x16xf32>, vector<16x32xf32>, vector<1x32xf32> -> vector<1x32xf32>
      %c0_86 = arith.constant 0 : index
      %c0_87 = arith.constant 0 : index
      %208 = vector.load %arg25[%c0_86, %c0_87] : memref<1x32xf32, #tpu.memory_space<vmem>>, vector<1x32xf32>
      %209 = arith.addf %207, %208 : vector<1x32xf32>
      %c0_88 = arith.constant 0 : index
      %c0_89 = arith.constant 0 : index
      %210 = vector.load %arg26[%c0_88, %c0_89] : memref<32x10xf32, #tpu.memory_space<vmem>>, vector<32x10xf32>
      %cst_90 = arith.constant dense<0.000000e+00> : vector<1x10xf32>
      %211 = tpu.matmul %209, %210, %cst_90 {dimension_numbers = #tpu.dot_dimension_numbers<[1], [0], [0], [1], [0, 0, 1, 1], [], []>} : vector<1x32xf32>, vector<32x10xf32>, vector<1x10xf32> -> vector<1x10xf32>
      %c0_91 = arith.constant 0 : index
      %c0_92 = arith.constant 0 : index
      %212 = vector.load %arg27[%c0_91, %c0_92] : memref<1x10xf32, #tpu.memory_space<vmem>>, vector<1x10xf32>
      %213 = arith.addf %211, %212 : vector<1x10xf32>
      %214 = vector.shape_cast %213 : vector<1x10xf32> to vector<1x1x10xf32>
      %c0_93 = arith.constant 0 : index
      %c0_94 = arith.constant 0 : index
      %c0_95 = arith.constant 0 : index
      %215 = vector.load %arg28[%c0_93, %c0_94, %c0_95] : memref<1x1x10xf32, #tpu.memory_space<vmem>>, vector<1x1x10xf32>
      tpu.vector_store %arg28[%c0_93, %c0_94, %c0_95], %214 {strides = array<i32>} : memref<1x1x10xf32, #tpu.memory_space<vmem>>, vector<1x1x10xf32>,
    } else {
    }
    return
  }
  func.func @transform_0(%arg0: i32, %arg1: i32) -> (i32, i32, i32) {
    %c0_i32 = arith.constant 0 : i32
    %c0_i32_0 = arith.constant 0 : i32
    %c0_i32_1 = arith.constant 0 : i32
    return %arg0, %c0_i32, %c0_i32_0 : i32, i32, i32
  }
  func.func @transform_1(%arg0: i32, %arg1: i32) -> (i32, i32) {
    %c0_i32 = arith.constant 0 : i32
    %c0_i32_0 = arith.constant 0 : i32
    %c0_i32_1 = arith.constant 0 : i32
    return %c0_i32, %c0_i32_0 : i32, i32
  }
  func.func @transform_2(%arg0: i32, %arg1: i32) -> (i32, i32) {
    %c0_i32 = arith.constant 0 : i32
    %c0_i32_0 = arith.constant 0 : i32
    %c0_i32_1 = arith.constant 0 : i32
    return %c0_i32, %c0_i32_0 : i32, i32
  }
  func.func @transform_3(%arg0: i32, %arg1: i32) -> (i32, i32) {
    %c0_i32 = arith.constant 0 : i32
    %c0_i32_0 = arith.constant 0 : i32
    %c0_i32_1 = arith.constant 0 : i32
    return %c0_i32, %c0_i32_0 : i32, i32
  }
  func.func @transform_4(%arg0: i32, %arg1: i32) -> (i32, i32) {
    %c0_i32 = arith.constant 0 : i32
    %c0_i32_0 = arith.constant 0 : i32
    %c0_i32_1 = arith.constant 0 : i32
    return %c0_i32, %c0_i32_0 : i32, i32
  }
  func.func @transform_5(%arg0: i32, %arg1: i32) -> (i32, i32, i32) {
    %c0_i32 = arith.constant 0 : i32
    %c0_i32_0 = arith.constant 0 : i32
    %c0_i32_1 = arith.constant 0 : i32
    return %arg1, %c0_i32, %c0_i32_0 : i32, i32, i32
  }
  func.func @transform_6(%arg0: i32, %arg1: i32) -> (i32, i32, i32) {
    %c0_i32 = arith.constant 0 : i32
    %c0_i32_0 = arith.constant 0 : i32
    %c0_i32_1 = arith.constant 0 : i32
    return %arg1, %c0_i32, %c0_i32_0 : i32, i32, i32
  }
  func.func @transform_7(%arg0: i32, %arg1: i32) -> (i32, i32, i32) {
    %c0_i32 = arith.constant 0 : i32
    %c0_i32_0 = arith.constant 0 : i32
    %c0_i32_1 = arith.constant 0 : i32
    return %arg1, %c0_i32, %c0_i32_0 : i32, i32, i32
  }
  func.func @transform_8(%arg0: i32, %arg1: i32) -> (i32, i32, i32) {
    %c0_i32 = arith.constant 0 : i32
    %c0_i32_0 = arith.constant 0 : i32
    %c0_i32_1 = arith.constant 0 : i32
    return %arg1, %c0_i32, %c0_i32_0 : i32, i32, i32
  }
  func.func @transform_9(%arg0: i32, %arg1: i32) -> (i32, i32, i32) {
    %c0_i32 = arith.constant 0 : i32
    %c0_i32_0 = arith.constant 0 : i32
    %c0_i32_1 = arith.constant 0 : i32
    return %arg1, %c0_i32, %c0_i32_0 : i32, i32, i32
  }
  func.func @transform_10(%arg0: i32, %arg1: i32) -> (i32, i32, i32) {
    %c0_i32 = arith.constant 0 : i32
    %c0_i32_0 = arith.constant 0 : i32
    %c0_i32_1 = arith.constant 0 : i32
    return %arg1, %c0_i32, %c0_i32_0 : i32, i32, i32
  }
  func.func @transform_11(%arg0: i32, %arg1: i32) -> (i32, i32, i32) {
    %c0_i32 = arith.constant 0 : i32
    %c0_i32_0 = arith.constant 0 : i32
    %c0_i32_1 = arith.constant 0 : i32
    return %arg1, %c0_i32, %c0_i32_0 : i32, i32, i32
  }
  func.func @transform_12(%arg0: i32, %arg1: i32) -> (i32, i32, i32) {
    %c0_i32 = arith.constant 0 : i32
    %c0_i32_0 = arith.constant 0 : i32
    %c0_i32_1 = arith.constant 0 : i32
    return %arg1, %c0_i32, %c0_i32_0 : i32, i32, i32
  }
  func.func @transform_13(%arg0: i32, %arg1: i32) -> (i32, i32, i32) {
    %c0_i32 = arith.constant 0 : i32
    %c0_i32_0 = arith.constant 0 : i32
    %c0_i32_1 = arith.constant 0 : i32
    return %arg1, %c0_i32, %c0_i32_0 : i32, i32, i32
  }
  func.func @transform_14(%arg0: i32, %arg1: i32) -> (i32, i32, i32) {
    %c0_i32 = arith.constant 0 : i32
    %c0_i32_0 = arith.constant 0 : i32
    %c0_i32_1 = arith.constant 0 : i32
    return %arg1, %c0_i32, %c0_i32_0 : i32, i32, i32
  }
  func.func @transform_15(%arg0: i32, %arg1: i32) -> (i32, i32, i32) {
    %c0_i32 = arith.constant 0 : i32
    %c0_i32_0 = arith.constant 0 : i32
    %c0_i32_1 = arith.constant 0 : i32
    return %arg1, %c0_i32, %c0_i32_0 : i32, i32, i32
  }
  func.func @transform_16(%arg0: i32, %arg1: i32) -> (i32, i32, i32) {
    %c0_i32 = arith.constant 0 : i32
    %c0_i32_0 = arith.constant 0 : i32
    %c0_i32_1 = arith.constant 0 : i32
    return %arg1, %c0_i32, %c0_i32_0 : i32, i32, i32
  }
  func.func @transform_17(%arg0: i32, %arg1: i32) -> (i32, i32) {
    %c0_i32 = arith.constant 0 : i32
    %c0_i32_0 = arith.constant 0 : i32
    %c0_i32_1 = arith.constant 0 : i32
    return %c0_i32, %c0_i32_0 : i32, i32
  }
  func.func @transform_18(%arg0: i32, %arg1: i32) -> (i32, i32) {
    %c0_i32 = arith.constant 0 : i32
    %c0_i32_0 = arith.constant 0 : i32
    %c0_i32_1 = arith.constant 0 : i32
    return %c0_i32, %c0_i32_0 : i32, i32
  }
  func.func @transform_19(%arg0: i32, %arg1: i32) -> (i32, i32) {
    %c0_i32 = arith.constant 0 : i32
    %c0_i32_0 = arith.constant 0 : i32
    %c0_i32_1 = arith.constant 0 : i32
    return %c0_i32, %c0_i32_0 : i32, i32
  }
  func.func @transform_20(%arg0: i32, %arg1: i32) -> (i32, i32) {
    %c0_i32 = arith.constant 0 : i32
    %c0_i32_0 = arith.constant 0 : i32
    %c0_i32_1 = arith.constant 0 : i32
    return %c0_i32, %c0_i32_0 : i32, i32
  }
  func.func @transform_21(%arg0: i32, %arg1: i32) -> (i32, i32, i32) {
    %c0_i32 = arith.constant 0 : i32
    %c0_i32_0 = arith.constant 0 : i32
    %c0_i32_1 = arith.constant 0 : i32
    return %arg0, %c0_i32, %c0_i32_0 : i32, i32, i32
  }
  func.func @transform_22(%arg0: i32, %arg1: i32) -> (i32, i32) {
    %c0_i32 = arith.constant 0 : i32
    %c0_i32_0 = arith.constant 0 : i32
    %c0_i32_1 = arith.constant 0 : i32
    return %c0_i32, %c0_i32_0 : i32, i32
  }
  func.func @transform_23(%arg0: i32, %arg1: i32) -> (i32, i32) {
    %c0_i32 = arith.constant 0 : i32
    %c0_i32_0 = arith.constant 0 : i32
    %c0_i32_1 = arith.constant 0 : i32
    return %c0_i32, %c0_i32_0 : i32, i32
  }
  func.func @transform_24(%arg0: i32, %arg1: i32) -> (i32, i32) {
    %c0_i32 = arith.constant 0 : i32
    %c0_i32_0 = arith.constant 0 : i32
    %c0_i32_1 = arith.constant 0 : i32
    return %c0_i32, %c0_i32_0 : i32, i32
  }
  func.func @transform_25(%arg0: i32, %arg1: i32) -> (i32, i32) {
    %c0_i32 = arith.constant 0 : i32
    %c0_i32_0 = arith.constant 0 : i32
    %c0_i32_1 = arith.constant 0 : i32
    return %c0_i32, %c0_i32_0 : i32, i32
  }
  func.func @transform_26(%arg0: i32, %arg1: i32) -> (i32, i32, i32) {
    %c0_i32 = arith.constant 0 : i32
    %c0_i32_0 = arith.constant 0 : i32
    %c0_i32_1 = arith.constant 0 : i32
    return %arg0, %c0_i32, %c0_i32_0 : i32, i32, i32
  }
}

</mosaic_0001>

<bundles_post_ra>
// kernel: tpu_custom_call.1
= control target key start
LH: loop header
LB: loop body
LE: loop exit
PB: predicated region body
PF: predicated region fallthrough
CT: control target
= control target key end

     0   :  { %s4469_s0 = inlined_call_operand.vmem [shape: f32[2,4,768], index: 0, kind: input, shape index: {}]   ;;  %s4470_s1 = inlined_call_operand.vmem [shape: f32[768,32], index: 1, kind: input, shape index: {}]   ;;  %s4471_s2 = inlined_call_operand.vmem [shape: f32[1,32], index: 2, kind: input, shape index: {}]   ;;  %s4472_s3 = inlined_call_operand.vmem [shape: f32[1,32], index: 3, kind: input, shape index: {}]   ;;  %s4473_s4 = inlined_call_operand.vmem [shape: f32[5,32], index: 4, kind: input, shape index: {}]   ;;  %s4474_s5 = inlined_call_operand.vmem [shape: f32[2,1,32], index: 5, kind: input, shape index: {}]   ;;  %s4475_s6 = inlined_call_operand.vmem [shape: f32[2,1,32], index: 6, kind: input, shape index: {}]   ;;  %s4476_s7 = inlined_call_operand.vmem [shape: bf16[2,32,96], index: 7, kind: input, shape index: {}]   ;;  %s4477_s8 = inlined_call_operand.vmem [shape: f32[2,1,96], index: 8, kind: input, shape index: {}]   ;;  %s4478_s9 = inlined_call_operand.vmem [shape: bf16[2,32,32], index: 9, kind: input, shape index: {}]   ;;  %s4479_s10 = inlined_call_operand.vmem [shape: f32[2,1,32], index: 10, kind: input, shape index: {}]   ;;  %s4480_s11 = inlined_call_operand.vmem [shape: f32[2,1,32], index: 11, kind: input, shape index: {}]   ;;  %s4481_s12 = inlined_call_operand.vmem [shape: f32[2,1,32], index: 12, kind: input, shape index: {}]   ;;  %s4482_s13 = inlined_call_operand.vmem [shape: bf16[2,32,128], index: 13, kind: input, shape index: {}]   ;;  %s4483_s14 = inlined_call_operand.vmem [shape: f32[2,1,128], index: 14, kind: input, shape index: {}]   ;;  %s4484_s15 = inlined_call_operand.vmem [shape: bf16[2,128,32], index: 15, kind: input, shape index: {}]   ;;  %s4485_s16 = inlined_call_operand.vmem [shape: f32[2,1,32], index: 16, kind: input, shape index: {}]   ;;  %s4486_s17 = inlined_call_operand.vmem [shape: f32[1,32], index: 17, kind: input, shape index: {}]   ;;  %s4487_s18 = inlined_call_operand.vmem [shape: f32[1,32], index: 18, kind: input, shape index: {}]   ;;  %s4488_s19 = inlined_call_operand.vmem [shape: f32[32,16], index: 19, kind: input, shape index: {}]   ;;  %s4489_s20 = inlined_call_operand.vmem [shape: f32[1,16], index: 20, kind: input, shape index: {}]   ;;  %s4490_s21 = inlined_call_operand.vmem [shape: f32[2,1,16], index: 21, kind: input, shape index: {}]   ;;  %s4491_s22 = inlined_call_operand.vmem [shape: f32[16,32], index: 22, kind: input, shape index: {}]   ;;  %s4492_s23 = inlined_call_operand.vmem [shape: f32[1,32], index: 23, kind: input, shape index: {}]   ;;  %s4493_s24 = inlined_call_operand.vmem [shape: f32[32,10], index: 24, kind: input, shape index: {}]   ;;  %s4494_s25 = inlined_call_operand.vmem [shape: f32[1,10], index: 25, kind: input, shape index: {}]   ;;  %s4495_s26 = inlined_call_operand.hbm [shape: f32[2,1,10], index: 26, kind: output, shape index: {}]  }
   0x1   :  { %4514 = sst [smem:[#allocation18_spill]] %s4469_s0 }
   0x2   :  { %4515 = sst [smem:[#allocation19_spill]] %s4470_s1 }
   0x3   :  { %4516 = sst [smem:[#allocation20_spill]] %s4471_s2 }
   0x4   :  { %4517 = sst [smem:[#allocation21_spill]] %s4472_s3 }
   0x5   :  { %4518 = sst [smem:[#allocation22_spill]] %s4473_s4 }
   0x6   :  { %4519 = sst [smem:[#allocation23_spill]] %s4474_s5 }
   0x7   :  { %4520 = sst [smem:[#allocation24_spill]] %s4475_s6 }
   0x8   :  { %4521 = sst [smem:[#allocation25_spill]] %s4476_s7 }
   0x9   :  { %4522 = sst [smem:[#allocation26_spill]] %s4477_s8 }
   0xa   :  { %4523 = sst [smem:[#allocation27_spill]] %s4478_s9 }
   0xb   :  { %4524 = sst [smem:[#allocation28_spill]] %s4479_s10 }
   0xc   :  { %4525 = sst [smem:[#allocation29_spill]] %s4486_s17 }
   0xd   :  { %4526 = sst [smem:[#allocation30_spill]] %s4487_s18 }
   0xe   :  { %4527 = sst [smem:[#allocation31_spill]] %s4488_s19 }
   0xf   :  { %4528 = sst [smem:[#allocation32_spill]] %s4489_s20 }
  0x10   :  { %4529 = sst [smem:[#allocation33_spill]] %s4490_s21 }
  0x11   :  { %4530 = sst [smem:[#allocation34_spill]] %s4491_s22 }
  0x12   :  { %4531 = sst [smem:[#allocation35_spill]] %s4492_s23 }
  0x13   :  { %4532 = sst [smem:[#allocation36_spill]] %s4493_s24 }
  0x14   :  { %4533 = sst [smem:[#allocation37_spill]] %s4494_s25 }
  0x15   :  { %4534 = sst [smem:[#allocation38_spill]] %s4495_s26 }
  0x16   :  { %31 = vsyncpa [#allocation4], 0 }
  0x17   :  { %33 = vsyncpa [#allocation4 + $0x1], 0  ;;  %s3746_s27 = smov 0   ;;  %s3748_s3 = smov 0  }
  0x18   :  { %s3750_s7 = smov 0   ;;  %s3752_s28 = smov 0  }
  0x19   :  { %s3754_s8 = smov 0   ;;  %s3756_s4 = smov 0  }
  0x1a   :  { %s3758_s29 = smov 0   ;;  %s3760_s0 = smov 0  }
  0x1b LB: > { %4535 = sst [smem:[#allocation6_spill]] %s3567_s27  ;;  %s2926_s9 = sadd.s32 4294967295, %s3595_s0   ;;  %s3595_s0 = sphi %s3760_s0, %s39_s0   ;;  %s3591_s29 = sphi %s3758_s29, %s4599_s29   ;;  %s3587_s4 = sphi %s3756_s4, %s4594_s4   ;;  %s3583_s8 = sphi %s3754_s8, %s4598_s8   ;;  %s3579_s28 = sphi %s3752_s28, %s4592_s28   ;;  %s3575_s7 = sphi %s3750_s7, %s4591_s7   ;;  %s3571_s3 = sphi %s3748_s3, %s4597_s3   ;;  %s3567_s27 = sphi %s3746_s27, %s4596_s27  }
  0x1c   : > { %4536 = sst [smem:[#allocation7_spill]] %s3575_s7  ;;  %s2927_s30 = sadd.s32 4294967294, %s3595_s0  }
  0x1d   : > { %4537 = sst [smem:[#allocation8_spill]] %s3583_s8  ;;  %s48_s2 = sadd.s32 1, %s3587_s4 }
  0x1e   : > { %4538 = sst [smem:[#allocation9_spill]] %s3587_s4  ;;  %p49_p0 = scmp.ge.s32.totalorder %s48_s2, 2 }
  0x1f   : > { %4539 = sst [smem:[#allocation10_spill]] %s3591_s29  ;;  %s51_s5 = sadd.s32 1, %s3591_s29 }
  0x20   : > { %4540 = sst [smem:[#allocation11_spill]] %s3595_s0  ;;  %p684_p1 = scmp.ne.s32.totalorder %s3575_s7, %s3571_s3 }
  0x21   : > { %p685_p2 = scmp.eq.s32.totalorder %s2926_s9, 3  ;;  %s4601_s2 = smov (%p49_p0, %s48_s2), 0 }
  0x22   : > { %4541 = sst [smem:[#allocation12_spill]] %s4601_s2  ;;  %s4603_s5 = smov (!%p49_p0, %s51_s5), %s3591_s29 }
  0x23   : > { %p3795_p3 = por %p685_p2, %p684_p1  ;;  %p690_p4 = scmp.ne.s32.totalorder %s3571_s3, %s3567_s27 }
  0x24   : > { %p53_p5 = scmp.ge.s32.totalorder %s4603_s5, 2  ;;  %p691_p6 = scmp.eq.s32.totalorder %s2927_s30, 3 }
  0x25   : > { %s4542_s10 = scalar_select %p3795_p3, 1, 0 }
  0x26   : > { %p2930_p7 = scmp.ge.s32.totalorder %s3595_s0, 1  ;;  %p839_p8 = scmp.lt.s32.totalorder %s3595_s0, 5 }
  0x27   : > { %4543 = sst [smem:[#allocation13_spill]] %s4542_s10  ;;  %s4605_s5 = smov (%p53_p5, %s4603_s5), 0 }
  0x28   : > { %4544 = sst [smem:[#allocation14_spill]] %s4605_s5  ;;  %p3805_p9 = por %p691_p6, %p690_p4 }
  0x29   : > { %p840_p10 = pnand %p2930_p7, %p839_p8  ;;  %s671_s1 = ssub.s32 %s3591_s29, %s4605_s5 }
  0x2a   : > { %s4545_s6 = scalar_select %p3805_p9, 1, 0 }
  0x2b   : > { %s674_s9 = sadd.s32 1, %s3575_s7  ;;  %p672_p11 = scmp.eq.s32.totalorder %s671_s1, 0 }
  0x2c   : > { %4546 = sst [smem:[#allocation15_spill]] %s4545_s6  ;;  %843 = sbr.rel (%p840_p10) target bundleno = 4137 (0x1029), region = 124 }
  0x2d   : > { %s3813_s2 = scalar_select %p672_p11, %s3575_s7, %s674_s9  }
  0x2f   : > { %4547 = sst [smem:[#allocation16_spill]] %s3813_s2 }
  0x33   : > { %p955_p12 = scmp.lt.s32.totalorder %s3583_s8, 1  ;;  %p960_p13 = scmp.lt.s32.totalorder %s3579_s28, 1 }
  0x34   : > { %s4552_s24 = sld [smem:[#allocation18_spill]]  ;;  %s4553_s19 = sld [smem:[#allocation25_spill]] }
  0x35   : > { %s3819_s4 = scalar_select %p955_p12, %s3583_s8, 1 }
  0x36   : > { %s3822_s6 = scalar_select %p960_p13, %s3579_s28, 1 }
  0x37   : > { %4548 = sst [smem:[#allocation17_spill]] %s3819_s4  ;;  %s3373_s1 = smul.u32 24, %s3819_s4 }
  0x38   : > { %s2993_s20 = sshll.u32 %s3822_s6, 4  ;;  %s4554_s29 = sld [smem:[#allocation26_spill]] }
  0x39   : > { %s4555_s21 = sld [smem:[#allocation27_spill]]  ;;  %s4556_s23 = sld [smem:[#allocation28_spill]] }
  0x3a   : > { %s3840_s22 = scalar_lea.vmem %s4552_s24, %s3373_s1  ;;  %s3846_s30 = scalar_lea.vmem %s4553_s19, %s2993_s20 }
  0x3b   : > { %s987_s19 = scalar_lea.vmem %s4481_s12, %s3822_s6  ;;  %s3872_s9 = scalar_lea.vmem %s4482_s13, %s2993_s20 }
  0x3c   : > { %s2996_s7 = sshll.u32 %s3822_s6, 6  ;;  %s4557_s17 = sand.u32 1, %s3571_s3  }
  0x3d   : > { %s3886_s8 = scalar_lea.vmem %s4484_s15, %s2996_s7  ;;  %s3890_s18 = scalar_lea.vmem [#allocation3], %s4557_s17 }
  0x3e   : > { %s973_s2 = scalar_lea.vmem %s4554_s29, %s3822_s6  ;;  %s995_s29 = scalar_lea.vmem %s4483_s14, %s3822_s6 }
  0x3f   : > { %s3855_s26 = scalar_lea.vmem %s4555_s21, %s2993_s20  ;;  %s981_s24 = scalar_lea.vmem %s4556_s23, %s3822_s6 }
  0x40   : > { %p2940_p0 = scmp.ne.s32.totalorder %s3579_s28, 0 }
  0x41   : > { %s4558_s5 = sld [smem:[#allocation19_spill]] (!%p2940_p0)  ;;  %s4559_s21 = sld [smem:[#allocation21_spill]] (!%p2940_p0)  ;;  %vm1340_vm0 = vcmask (!%p2940_p0), 253952   ;;  %vm1344_vm1 = vcmask (!%p2940_p0), 257024  }
  0x42   : > { %1011 = sbr.rel (%p2940_p0) target bundleno = 358 (0x166), region = 128  ;;  %s4560_s10 = sld [smem:[#allocation22_spill]] (!%p2940_p0) }
  0x43   : > { %s4561_s1 = sld [smem:[#allocation20_spill]] (!%p2940_p0) }
  0x47   : > { %v1031_v0 = vld [vmem:[%s4558_s5 + $0x80] sm:$0xff] (!%p2940_p0)  ;;  %v1032_v1 = vld [vmem:[%s4558_s5 + $0x88] sm:$0xff] (!%p2940_p0)  ;;  %v1033_v11 = vld [vmem:[%s4558_s5 + $0x90] sm:$0xff] (!%p2940_p0) }
  0x48   : > { %v1015_v2 = vld [vmem:[%s4558_s5] sm:$0xff] (!%p2940_p0)  ;;  %v3262_v3 = vpack.c.bf16 (!%p2940_p0), %v1032_v1, %v1031_v0  ;;  %v1016_v4 = vld [vmem:[%s4558_s5 + $0x8] sm:$0xff] (!%p2940_p0)  ;;  %v1034_v13 = vld [vmem:[%s4558_s5 + $0x98] sm:$0xff] (!%p2940_p0) }
  0x49   : > { %v1063_v5 = vld [vmem:[%s4558_s5 + $0x180] sm:$0xff]  ;;  %v1064_v6 = vld [vmem:[%s4558_s5 + $0x188] sm:$0xff]  ;;  %v3264_v7 = vpack.c.bf16 %v1016_v4, %v1015_v2  ;;  %v1017_v14 = vld [vmem:[%s4558_s5 + $0x10] sm:$0xff]  ;;  %v3266_v16 = vpack.c.bf16 %v1034_v13, %v1033_v11 }
  0x4a   : > { %v3294_v8 = vpack.c.bf16 %v1064_v6, %v1063_v5  ;;  %v1047_v9 = vld [vmem:[%s4558_s5 + $0x100] sm:$0xff]  ;;  %v1048_v10 = vld [vmem:[%s4558_s5 + $0x108] sm:$0xff]  ;;  %3263 = vmatprep.subr.bf16.mxu0 %v3262_v3  ;;  %v1018_v15 = vld [vmem:[%s4558_s5 + $0x18] sm:$0xff] }
  0x4b   : > { %v3296_v12 = vpack.c.bf16 %v1048_v10, %v1047_v9  ;;  %3265 = vmatpush3.bf16.msra.mxu0 %v3264_v7  ;;  %v3268_v17 = vpack.c.bf16 %v1018_v15, %v1017_v14  ;;  %v1065_v18 = vld [vmem:[%s4558_s5 + $0x190] sm:$0xff]  ;;  %v1066_v19 = vld [vmem:[%s4558_s5 + $0x198] sm:$0xff]  ;;  %v1035_v23 = vld [vmem:[%s4558_s5 + $0xa0] sm:$0xff] }
  0x4c   : > { %3295 = vmatprep.subr.bf16.mxu1 %v3294_v8  ;;  %v1049_v20 = vld [vmem:[%s4558_s5 + $0x110] sm:$0xff]  ;;  %v3298_v21 = vpack.c.bf16 %v1066_v19, %v1065_v18  ;;  %v1050_v22 = vld [vmem:[%s4558_s5 + $0x118] sm:$0xff]  ;;  %v1036_v24 = vld [vmem:[%s4558_s5 + $0xa8] sm:$0xff]  ;;  %3267 = vmatprep.subr.bf16.mxu0 %v3266_v16 }
  0x4d   : > { %3297 = vmatpush3.bf16.msra.mxu1 %v3296_v12  ;;  %v3300_v25 = vpack.c.bf16 %v1050_v22, %v1049_v20  ;;  %v3270_v26 = vpack.c.bf16 %v1036_v24, %v1035_v23  ;;  %v1019_v27 = vld [vmem:[%s4558_s5 + $0x20] sm:$0xff]  ;;  %v1020_v28 = vld [vmem:[%s4558_s5 + $0x28] sm:$0xff]  ;;  %v1037_v35 = vld [vmem:[%s4558_s5 + $0xb0] sm:$0xff] }
  0x4e   : > { %v1067_v29 = vld [vmem:[%s4558_s5 + $0x1a0] sm:$0xff]  ;;  %3299 = vmatprep.subr.bf16.mxu1 %v3298_v21  ;;  %v1068_v30 = vld [vmem:[%s4558_s5 + $0x1a8] sm:$0xff]  ;;  %v3272_v33 = vpack.c.bf16 %v1020_v28, %v1019_v27  ;;  %v1038_v36 = vld [vmem:[%s4558_s5 + $0xb8] sm:$0xff] }
  0x4f   : > { %v1051_v31 = vld [vmem:[%s4558_s5 + $0x120] sm:$0xff]  ;;  %v1052_v32 = vld [vmem:[%s4558_s5 + $0x128] sm:$0xff]  ;;  %3269 = vmatpush3.bf16.msra.mxu0 %v3268_v17  ;;  %v3302_v34 = vpack.c.bf16 %v1068_v30, %v1067_v29  ;;  %v1021_v37 = vld [vmem:[%s4558_s5 + $0x30] sm:$0xff]  ;;  %v3274_v39 = vpack.c.bf16 %v1038_v36, %v1037_v35 }
  0x50   : > { %3271 = vmatprep.subr.bf16.mxu0 %v3270_v26  ;;  %v3304_v38 = vpack.c.bf16 %v1052_v32, %v1051_v31  ;;  %v1022_v40 = vld [vmem:[%s4558_s5 + $0x38] sm:$0xff]  ;;  %v1069_v41 = vld [vmem:[%s4558_s5 + $0x1b0] sm:$0xff]  ;;  %v1039_v46 = vld [vmem:[%s4558_s5 + $0xc0] sm:$0xff] }
  0x51   : > { %3301 = vmatpush3.bf16.msra.mxu1 %v3300_v25  ;;  %v1070_v42 = vld [vmem:[%s4558_s5 + $0x1b8] sm:$0xff]  ;;  %v1053_v44 = vld [vmem:[%s4558_s5 + $0x130] sm:$0xff]  ;;  %v1040_v47 = vld [vmem:[%s4558_s5 + $0xc8] sm:$0xff]  ;;  %v3276_v48 = vpack.c.bf16 %v1022_v40, %v1021_v37 }
  0x52   : > { %3303 = vmatprep.subr.bf16.mxu1 %v3302_v34  ;;  %v3306_v43 = vpack.c.bf16 %v1070_v42, %v1069_v41  ;;  %v1054_v45 = vld [vmem:[%s4558_s5 + $0x138] sm:$0xff]  ;;  %v1071_v49 = vld [vmem:[%s4558_s5 + $0x1c0] sm:$0xff]  ;;  %v1072_v50 = vld [vmem:[%s4558_s5 + $0x1c8] sm:$0xff]  ;;  %v3278_v52 = vpack.c.bf16 %v1040_v47, %v1039_v46 }
  0x53   : > { %3273 = vmatpush3.bf16.msra.mxu0 %v3272_v33  ;;  %v3308_v51 = vpack.c.bf16 %v1054_v45, %v1053_v44  ;;  %v1023_v53 = vld [vmem:[%s4558_s5 + $0x40] sm:$0xff]  ;;  %v1024_v54 = vld [vmem:[%s4558_s5 + $0x48] sm:$0xff]  ;;  %v3310_v56 = vpack.c.bf16 %v1072_v50, %v1071_v49  ;;  %v1041_v58 = vld [vmem:[%s4558_s5 + $0xd0] sm:$0xff] }
  0x54   : > { %3275 = vmatprep.subr.bf16.mxu0 %v3274_v39  ;;  %v1055_v55 = vld [vmem:[%s4558_s5 + $0x140] sm:$0xff]  ;;  %v1056_v57 = vld [vmem:[%s4558_s5 + $0x148] sm:$0xff]  ;;  %v1042_v59 = vld [vmem:[%s4558_s5 + $0xd8] sm:$0xff]  ;;  %v3280_v62 = vpack.c.bf16 %v1024_v54, %v1023_v53 }
  0x55   : > { %3305 = vmatpush3.bf16.msra.mxu1 %v3304_v38  ;;  %v1073_v60 = vld [vmem:[%s4558_s5 + $0x1d0] sm:$0xff]  ;;  %v1074_v61 = vld [vmem:[%s4558_s5 + $0x1d8] sm:$0xff]  ;;  %v3312_v63 = vpack.c.bf16 %v1056_v57, %v1055_v55  ;;  %v3282_v0 = vpack.c.bf16 %v1042_v59, %v1041_v58  ;;  %v1043_v6 = vld [vmem:[%s4558_s5 + $0xe0] sm:$0xff] }
  0x56   : > { %3307 = vmatprep.subr.bf16.mxu1 %v3306_v43  ;;  %v1025_v1 = vld [vmem:[%s4558_s5 + $0x50] sm:$0xff]  ;;  %v1026_v2 = vld [vmem:[%s4558_s5 + $0x58] sm:$0xff]  ;;  %v3314_v4 = vpack.c.bf16 %v1074_v61, %v1073_v60  ;;  %v1044_v7 = vld [vmem:[%s4558_s5 + $0xe8] sm:$0xff] }
  0x57   : > { %3277 = vmatpush3.bf16.msra.mxu0 %v3276_v48  ;;  %v1057_v3 = vld [vmem:[%s4558_s5 + $0x150] sm:$0xff]  ;;  %v1058_v5 = vld [vmem:[%s4558_s5 + $0x158] sm:$0xff]  ;;  %v1075_v8 = vld [vmem:[%s4558_s5 + $0x1e0] sm:$0xff]  ;;  %v3284_v10 = vpack.c.bf16 %v1026_v2, %v1025_v1  ;;  %v3286_v14 = vpack.c.bf16 %v1044_v7, %v1043_v6 }
  0x58   : > { %3279 = vmatprep.subr.bf16.mxu0 %v3278_v52  ;;  %v1076_v9 = vld [vmem:[%s4558_s5 + $0x1e8] sm:$0xff]  ;;  %v1027_v11 = vld [vmem:[%s4558_s5 + $0x60] sm:$0xff]  ;;  %v3316_v13 = vpack.c.bf16 %v1058_v5, %v1057_v3  ;;  %v1045_v20 = vld [vmem:[%s4558_s5 + $0xf0] sm:$0xff] }
  0x59   : > { %3309 = vmatpush3.bf16.msra.mxu1 %v3308_v51  ;;  %v1012_v12 = vld [vmem:[%s3840_s22] sm:$0xff]  ;;  %v1028_v15 = vld [vmem:[%s4558_s5 + $0x68] sm:$0xff]  ;;  %v3318_v19 = vpack.c.bf16 %v1076_v9, %v1075_v8  ;;  %v1046_v21 = vld [vmem:[%s4558_s5 + $0xf8] sm:$0xff] }
  0x5a   : > { %3311 = vmatprep.subr.bf16.mxu1 %v3310_v56  ;;  %v1059_v16 = vld [vmem:[%s4558_s5 + $0x160] sm:$0xff]  ;;  %v1060_v17 = vld [vmem:[%s4558_s5 + $0x168] sm:$0xff]  ;;  %v1121_v18 = vcombine.high %v1012_v12, %v1012_v12  ;;  %v1077_v23 = vld [vmem:[%s4558_s5 + $0x1f0] sm:$0xff]  ;;  %v3288_v26 = vpack.c.bf16 %v1028_v15, %v1027_v11  ;;  %v3290_v28 = vpack.c.bf16 %v1046_v21, %v1045_v20 }
  0x5b   : > { %3281 = vmatpush3.bf16.msra.mxu0 %v3280_v62  ;;  %v1013_v22 = vld [vmem:[%s3840_s22 + $0x8] sm:$0xff]  ;;  %v1078_v24 = vld [vmem:[%s4558_s5 + $0x1f8] sm:$0xff]  ;;  %v3320_v27 = vpack.c.bf16 %v1060_v17, %v1059_v16  ;;  %v1029_v29 = vld [vmem:[%s4558_s5 + $0x70] sm:$0xff] }
  0x5c   : > { %3283 = vmatprep.subr.bf16.mxu0 %v3282_v0  ;;  %1191 = vmatprep.mubr.f32.mxu0 %v1121_v18  ;;  %v1122_v25 = vcombine.high %v1013_v22, %v1013_v22  ;;  %v1030_v30 = vld [vmem:[%s4558_s5 + $0x78] sm:$0xff]  ;;  %v1061_v31 = vld [vmem:[%s4558_s5 + $0x170] sm:$0xff]  ;;  %v3322_v32 = vpack.c.bf16 %v1078_v24, %v1077_v23  ;;  %v1095_v34 = vld [vmem:[%s4558_s5 + $0x280] sm:$0xff] }
  0x5d   : > { %3313 = vmatpush3.bf16.msra.mxu1 %v3312_v63  ;;  %v1062_v33 = vld [vmem:[%s4558_s5 + $0x178] sm:$0xff]  ;;  %v1096_v35 = vld [vmem:[%s4558_s5 + $0x288] sm:$0xff]  ;;  %v3292_v36 = vpack.c.bf16 %v1030_v30, %v1029_v29  ;;  %v1079_v39 = vld [vmem:[%s4558_s5 + $0x200] sm:$0xff] }
  0x5e   : > { %3315 = vmatprep.subr.bf16.mxu1 %v3314_v4  ;;  %1261 = vmatprep.mubr.f32.mxu1 %v1122_v25  ;;  %v3324_v37 = vpack.c.bf16 %v1062_v33, %v1061_v31  ;;  %v3326_v38 = vpack.c.bf16 %v1096_v35, %v1095_v34  ;;  %v1080_v40 = vld [vmem:[%s4558_s5 + $0x208] sm:$0xff]  ;;  %v1097_v41 = vld [vmem:[%s4558_s5 + $0x290] sm:$0xff]  ;;  %v1098_v42 = vld [vmem:[%s4558_s5 + $0x298] sm:$0xff] }
  0x5f   : > { %3285 = vmatpush3.bf16.msra.mxu0 %v3284_v10  ;;  %v3328_v43 = vpack.c.bf16 %v1080_v40, %v1079_v39  ;;  %v1014_v44 = vld [vmem:[%s3840_s22 + $0x10] sm:$0xff]  ;;  %v3330_v45 = vpack.c.bf16 %v1098_v42, %v1097_v41  ;;  %v1082_v47 = vld [vmem:[%s4558_s5 + $0x218] sm:$0xff]  ;;  %v1099_v49 = vld [vmem:[%s4558_s5 + $0x2a0] sm:$0xff] }
  0x60   : > { %3287 = vmatprep.subr.bf16.mxu0 %v3286_v14  ;;  %v1081_v46 = vld [vmem:[%s4558_s5 + $0x210] sm:$0xff]  ;;  %v1123_v48 = vcombine.high %v1014_v44, %v1014_v44  ;;  %v1100_v50 = vld [vmem:[%s4558_s5 + $0x2a8] sm:$0xff]  ;;  %v1083_v53 = vld [vmem:[%s4558_s5 + $0x220] sm:$0xff] }
  0x61   : > { %3317 = vmatpush3.bf16.msra.mxu1 %v3316_v13  ;;  %v3332_v51 = vpack.c.bf16 %v1082_v47, %v1081_v46  ;;  %v3334_v52 = vpack.c.bf16 %v1100_v50, %v1099_v49  ;;  %v1084_v54 = vld [vmem:[%s4558_s5 + $0x228] sm:$0xff]  ;;  %v1101_v55 = vld [vmem:[%s4558_s5 + $0x2b0] sm:$0xff]  ;;  %v1102_v56 = vld [vmem:[%s4558_s5 + $0x2b8] sm:$0xff] }
  0x62   : > { %3319 = vmatprep.subr.bf16.mxu1 %v3318_v19  ;;  %v3336_v57 = vpack.c.bf16 %v1084_v54, %v1083_v53  ;;  %v3338_v58 = vpack.c.bf16 %v1102_v56, %v1101_v55  ;;  %v1085_v59 = vld [vmem:[%s4558_s5 + $0x230] sm:$0xff]  ;;  %v1086_v60 = vld [vmem:[%s4558_s5 + $0x238] sm:$0xff]  ;;  %v1103_v61 = vld [vmem:[%s4558_s5 + $0x2c0] sm:$0xff] }
  0x63   : > { %3289 = vmatpush3.bf16.msra.mxu0 %v3288_v26  ;;  %v1104_v62 = vld [vmem:[%s4558_s5 + $0x2c8] sm:$0xff]  ;;  %v3340_v63 = vpack.c.bf16 %v1086_v60, %v1085_v59  ;;  %v1087_v1 = vld [vmem:[%s4558_s5 + $0x240] sm:$0xff]  ;;  %v1105_v3 = vld [vmem:[%s4558_s5 + $0x2d0] sm:$0xff] }
  0x64   : > { %3291 = vmatprep.subr.bf16.mxu0 %v3290_v28  ;;  %v3342_v0 = vpack.c.bf16 %v1104_v62, %v1103_v61  ;;  %v1088_v2 = vld [vmem:[%s4558_s5 + $0x248] sm:$0xff]  ;;  %v1106_v4 = vld [vmem:[%s4558_s5 + $0x2d8] sm:$0xff]  ;;  %v1089_v7 = vld [vmem:[%s4558_s5 + $0x250] sm:$0xff] }
  0x65   : > { %3321 = vmatpush3.bf16.msra.mxu1 %v3320_v27  ;;  %v3344_v5 = vpack.c.bf16 %v1088_v2, %v1087_v1  ;;  %v3346_v6 = vpack.c.bf16 %v1106_v4, %v1105_v3  ;;  %v1090_v8 = vld [vmem:[%s4558_s5 + $0x258] sm:$0xff]  ;;  %v1107_v9 = vld [vmem:[%s4558_s5 + $0x2e0] sm:$0xff]  ;;  %v1108_v10 = vld [vmem:[%s4558_s5 + $0x2e8] sm:$0xff] }
  0x66   : > { %3323 = vmatprep.subr.bf16.mxu1 %v3322_v32  ;;  %v3348_v11 = vpack.c.bf16 %v1090_v8, %v1089_v7  ;;  %v1091_v13 = vld [vmem:[%s4558_s5 + $0x260] sm:$0xff]  ;;  %v1092_v14 = vld [vmem:[%s4558_s5 + $0x268] sm:$0xff]  ;;  %v1109_v15 = vld [vmem:[%s4558_s5 + $0x2f0] sm:$0xff] }
  0x67   : > { %3293 = vmatpush3.bf16.msra.mxu0 %v3292_v36  ;;  %v1110_v16 = vld [vmem:[%s4558_s5 + $0x2f8] sm:$0xff]  ;;  %v3352_v17 = vpack.c.bf16 %v1092_v14, %v1091_v13  ;;  %v1093_v19 = vld [vmem:[%s4558_s5 + $0x270] sm:$0xff]  ;;  %v1338_v23 = vld [vmem:[%s4560_s10] sm:$0x1] }
  0x68   : > { %3327 = vmatprep.subr.bf16.mxu0 %v3326_v38  ;;  %v3354_v18 = vpack.c.bf16 %v1110_v16, %v1109_v15  ;;  %v1094_v20 = vld [vmem:[%s4558_s5 + $0x278] sm:$0xff]  ;;  %v2941_v26 = vld [vmem:[%s4561_s1] ss:$0 sm:$0xff] }
  0x69   : > { %3325 = vmatpush3.bf16.msra.mxu1 %v3324_v37  ;;  %v3356_v21 = vpack.c.bf16 %v1094_v20, %v1093_v19  ;;  %v1342_v37 = vld [vmem:[%s4560_s10 + $0x1] sm:$0xf] }
  0x6a   : > { %1192 = vmatmul.mubr.f32.vlgmr.msra.gmra.mrb[0].mxu0 %v1012_v12  ;;  %v3350_v12 = vpack.c.bf16 %v1108_v10, %v1107_v9 }
  0x6b   : > { %3329 = vmatpush3.bf16.msra.mxu0 %v3328_v43  ;;  %1331 = vmatprep.mubr.f32.mxu0 %v1123_v48 }
  0x6c   : > { %1262 = vmatmul.mubr.f32.vlgmr.msra.gmra.mrb[0].mxu1 %v1013_v22  ;;  %3331 = vmatprep.subr.bf16.mxu0 %v3330_v45  ;;  %v1337_v22 = vld [vmem:[%s4559_s21] sm:$0x1] }
  0x6d   : > { %v1339_v24 = vadd.f32 %v1338_v23, %v1337_v22 }
  0x6f   : > { %3333 = vmatpush3.bf16.msra.mxu0 %v3332_v51  ;;  %1341 = vst.msk [vmem:[#allocation2] sm:$0x1] %vm1340_vm0, %v1339_v24 }
  0x70   : > { %3335 = vmatprep.subr.bf16.mxu0 %v3334_v52 }
  0x73   : > { %3337 = vmatpush3.bf16.msra.mxu0 %v3336_v57 }
  0x74   : > { %3339 = vmatprep.subr.bf16.mxu0 %v3338_v58 }
  0x77   : > { %3341 = vmatpush3.bf16.msra.mxu0 %v3340_v63 }
  0x78   : > { %3343 = vmatprep.subr.bf16.mxu0 %v3342_v0 }
  0x7b   : > { %3345 = vmatpush3.bf16.msra.mxu0 %v3344_v5 }
  0x7c   : > { %3347 = vmatprep.subr.bf16.mxu0 %v3346_v6 }
  0x7f   : > { %3349 = vmatpush3.bf16.msra.mxu0 %v3348_v11 }
  0x80   : > { %3351 = vmatprep.subr.bf16.mxu0 %v3350_v12 }
  0x83   : > { %3353 = vmatpush3.bf16.msra.mxu0 %v3352_v17 }
  0x84   : > { %3355 = vmatprep.subr.bf16.mxu0 %v3354_v18 }
  0x87   : > { %3357 = vmatpush3.bf16.msra.mxu0 %v3356_v21 }
  0x8a   : > { %1332 = vmatmul.mubr.f32.vlgmr.msra.gmra.mrb[2].mxu0 %v1014_v44 }
 0x13d   : > { %v3029_v25 = vpop.f32.mrb[0].mxu0 }
 0x13e   : > { %v3030_v27 = vpop.f32.mrb[1].mxu0 }
 0x13f   : > { %v3064_v28 = vpop.f32.mrb[0].mxu1  ;;  %v3031_v29 = vadd.f32 %v3030_v27, %v3029_v25 }
 0x140   : > { %v3065_v30 = vpop.f32.mrb[1].mxu1 }
 0x141   : > { %v3066_v31 = vadd.f32 %v3065_v30, %v3064_v28  ;;  %v1194_v32 = vadd.f32 %v3031_v29, %v2941_v26 }
 0x143   : > { %v1264_v33 = vadd.f32 %v3066_v31, %v1194_v32 }
 0x15d   : > { %v3099_v34 = vpop.f32.mrb[2].mxu0 }
 0x15e   : > { %v3100_v35 = vpop.f32.mrb[3].mxu0 }
 0x15f   : > { %v3101_v36 = vadd.f32 %v3100_v35, %v3099_v34 }
 0x161   : > { %v1334_v38 = vadd.f32 %v3101_v36, %v1264_v33 }
 0x163   : > { %v1343_v39 = vadd.f32 %v1342_v37, %v1334_v38 }
 0x165   : > { %1345 = vst.msk [vmem:[#allocation2 + $0x1] sm:$0xf] %vm1344_vm1, %v1343_v39 }
 0x166 PF: > { %vm1349_vm2 = vcmask 258048   ;;  %v3461_v47 = vld [vmem:[%s3846_s30] sm:$0xff]   ;;  %v3597_v48 = vmov 0.0   ;;  %vm3598_vm3 = vmmov 0   ;;  %v3462_v49 = vld [vmem:[%s3846_s30 + $0x8] sm:$0xff]   ;;  %s4562_s27 = sld [smem:[#allocation23_spill]]  ;;  %s4568_s1 = scalar_lea.vmem %s4480_s11, %s3822_s6 }
 0x167   : > { %3149 = vmatprep.subr.bf16.mxu0 %v3597_v48  ;;  %3153 = vmatprep.mubr.msk.bf16.mxu0 %vm3598_vm3, %v3597_v48  ;;  %s4564_s22 = sld [smem:[#allocation24_spill]]  ;;  %vm1402_vm4 = vcmask 261120   ;;  %v2944_v60 = vld [vmem:[%s973_s2] ss:$0 sm:$0xff]  ;;  %s3599_s17 = smov 104   ;;  %vm1462_vm5 = vcmask 64512  }
 0x168   : > { %3150 = vmatpush3.bf16.msra.mxu0 %v3461_v47  ;;  %3162 = vmatprep.subr.mxu1 %v3597_v48  ;;  %s3600_s20 = smov 120   ;;  %s3601_s4 = smov 112   ;;  %vm1769_vm6 = vcmask 36864   ;;  %vm1820_vm7 = vcmask 1044480   ;;  %vm1816_vm8 = vcmask 39936   ;;  %vm2137_vm9 = vcmask 130048  }
 0x169   : > { %3151 = vmatprep.subr.bf16.mxu0 %v3597_v48  ;;  %3164 = vmatprep.mubr.msk.f32.mxu1 %vm3598_vm3, %v3597_v48  ;;  %s3603_s2 = smov 64   ;;  %s3605_s21 = smov 16   ;;  %vm2139_vm10 = vcmask 195584  }
 0x16a   : > { %s3606_s0 = smov 24   ;;  %p2983_p1 = scmp.ne.s32.totalorder %s3579_s28, 1 }
 0x16b   : > { %vm3608_vm11 = vmmov (!%p2983_p1), 0   ;;  %s4572_s25 = sld [smem:[#allocation29_spill]] (!%p2983_p1)  ;;  %s4573_s23 = sld [smem:[#allocation30_spill]] (!%p2983_p1)  ;;  %vm2546_vm12 = vcmask (!%p2983_p1), 126976   ;;  %vm2716_vm13 = vcmask (!%p2983_p1), 73728  }
 0x16c   : > { %v4196_v40 = vld [vmem:[#allocation2] sm:$0x1f]  ;;  %3152 = vmatpush3.bf16.msra.mxu0 %v3462_v49  ;;  %s4563_s30 = scalar_lea.vmem %s4562_s27, %s3822_s6  ;;  %s3602_s27 = smov 96  }
 0x16d   : > { %v1350_v41 = vsel %vm1349_vm2, %v4196_v40, 0.0  ;;  %3157 = vmatprep.subr.mxu0 %v3597_v48  ;;  %v2942_v54 = vld [vmem:[%s4563_s30] ss:$0 sm:$0xff]  ;;  %s4565_s7 = scalar_lea.vmem %s4564_s22, %s3822_s6  ;;  %s3604_s30 = smov 8  }
 0x16e   : > { %1351 = vadd.xlane.f32.xlu0 %v1350_v41  ;;  %v2943_v56 = vld [vmem:[%s4565_s7] ss:$0 sm:$0xff] }
 0x1fb   : > { %v1352_v42 = vpop.xlane.xlu0 %1351 }
 0x1fc   : > { %v1354_v43 = vmul.f32 0.03125, %v1352_v42 }
 0x1fe   : > { %v1355_v44 = vsub.f32 %v4196_v40, %v1354_v43 }
 0x200   : > { %v1356_v45 = vmul.f32 %v1355_v44, %v1355_v44 }
 0x202   : > { %v1357_v46 = vsel %vm1349_vm2, %v1356_v45, 0.0 }
 0x203   : > { %1358 = vadd.xlane.f32.xlu0 %v1357_v46 }
 0x290   : > { %v1359_v50 = vpop.xlane.xlu0 %1358 }
 0x291   : > { %v1360_v51 = vmul.f32 0.03125, %v1359_v50 }
 0x293   : > { %v1361_v52 = vadd.f32 1e-06, %v1360_v51 }
 0x295   : > { %3475 = vrsqrt.f32 %v1361_v52 }
 0x29f   : > { %v3476_v53 = vpop.eup %3475 }
 0x2a0   : > { %v1363_v55 = vmul.f32 %v3476_v53, %v1355_v44 }
 0x2a2   : > { %v1370_v57 = vmul.f32 %v2942_v54, %v1363_v55 }
 0x2a4   : > { %v1377_v58 = vadd.f32 %v2943_v56, %v1370_v57 }
 0x2a6   : > { %v1378_v59 = vpack.c.bf16 %v1377_v58, %v1377_v58 }
 0x2a8   : > { %3154 = vmatmul.mubr.msk.bf16.vlgmr.msra.gmra.mrb[0].mxu0 %vm1402_vm4, %v1378_v59 }
 0x2a9   : > { %3159 = vmatprep.mubr.msk.f32.mxu0 %vm3598_vm3, %v3597_v48 }
 0x37b   : > { %v1440_v61 = vpop.f32.mrb[0].mxu0 }
 0x37c   : > { %v1441_v62 = vadd.f32 %v2944_v60, %v1440_v61  ;;  %v3155_v63 = vpop.f32.mrb[1].mxu0 }
 0x37d   : > { %v1443_v0 = vpop.f32.mrb[2].mxu0 }
 0x37e   : > { %1453 = vrot.lane.b32.xlu0 %v1441_v62, %s3599_s17  ;;  %1447 = vrot.lane.b32.xlu1 %v1441_v62, %s3600_s20  ;;  %v3156_v1 = vpop.f32.mrb[3].mxu0  ;;  %v1456_v6 = vmul.f32 0.35355338, %v1441_v62  ;;  %s4569_s20 = scalar_lea.vmem %s4485_s16, %s3822_s6  ;;  %s4575_s6 = sld [smem:[#allocation34_spill]] (!%p2983_p1) }
 0x37f   : > { %v3463_v1 = vld [vmem:[%s3855_s26] sm:$0xff]  }
 0x382   : > { %1450 = vrot.lane.b32.xlu1 %v1441_v62, %s3601_s4  ;;  %s4581_s4 = sld [smem:[#allocation35_spill]] (!%p2983_p1) }
 0x386   : > { %1460 = vrot.lane.b32.xlu1 %v1441_v62, %s3602_s27 }
 0x3f0   : > { %v4230_v2 = vpop.permute.xlu1 %1447  ;;  %v4233_v4 = vpop.permute.xlu0 %1453 }
 0x3f1   : > { %1538 = vrot.lane.b32.xlu1 %v4230_v2, %s3602_s27  ;;  %v1457_v8 = vmul.f32 0.35355338, %v4230_v2  ;;  %v1459_v12 = vmul.f32 0.35355338, %v4233_v4 }
 0x3f4   : > { %v1451_v3 = vpop.permute.xlu1 %1450 }
 0x3f5   : > { %1615 = vrot.lane.b32.xlu1 %v1451_v3, %s3602_s27  ;;  %v1458_v10 = vmul.f32 0.35355338, %v1451_v3 }
 0x3f8   : > { %v1461_v5 = vpop.permute.xlu1 %1460 }
 0x3f9   : > { %1692 = vrot.lane.b32.xlu1 %v4233_v4, %s3602_s27  ;;  %3158 = vmatpush3.xpose.msk.msra.mxu0 %vm1462_vm5, %v1461_v5  ;;  %s4570_s27 = sld [smem:[#allocation31_spill]] (!%p2983_p1) }
 0x3fa   : > { %3172 = vmatprep.subr.mxu0 %v3597_v48 }
 0x3fc   : > { %3160 = vmatmul.mubr.msk.f32.vlgmr.msra.gmra.mrb[4].mxu0 %vm1462_vm5, %v1456_v6 }
 0x3fd   : > { %3174 = vmatprep.mubr.msk.f32.mxu0 %vm3598_vm3, %v3597_v48 }
 0x463   : > { %v1539_v7 = vpop.permute.xlu1 %1538 }
 0x464   : > { %3163 = vmatpush3.xpose.msk.msra.mxu1 %vm1462_vm5, %v1539_v7 }
 0x465   : > { %3167 = vmatprep.subr.mxu1 %v3597_v48 }
 0x467   : > { %3165 = vmatmul.mubr.msk.f32.vlgmr.msra.gmra.mrb[0].mxu1 %vm1462_vm5, %v1457_v8  ;;  %v1616_v9 = vpop.permute.xlu1 %1615 }
 0x468   : > { %3168 = vmatpush3.xpose.msk.msra.mxu1 %vm1462_vm5, %v1616_v9  ;;  %3169 = vmatprep.mubr.msk.f32.mxu1 %vm3598_vm3, %v3597_v48 }
 0x469   : > { %3177 = vmatprep.subr.mxu1 %v3597_v48 }
 0x46b   : > { %3170 = vmatmul.mubr.msk.f32.vlgmr.msra.gmra.mrb[2].mxu1 %vm1462_vm5, %v1458_v10  ;;  %v1693_v11 = vpop.permute.xlu1 %1692 }
 0x46c   : > { %3173 = vmatpush3.xpose.msk.msra.mxu0 %vm1462_vm5, %v1693_v11  ;;  %3179 = vmatprep.mubr.msk.f32.mxu1 %vm3598_vm3, %v3597_v48 }
 0x46d   : > { %3182 = vmatprep.subr.mxu0 %v3597_v48 }
 0x46f   : > { %3175 = vmatmul.mubr.msk.f32.vlgmr.msra.gmra.mrb[6].mxu0 %vm1462_vm5, %v1459_v12 }
 0x470   : > { %3184 = vmatprep.mubr.msk.f32.mxu0 %vm3598_vm3, %v3597_v48 }
 0x4cf   : > { %v1534_v13 = vpop.f32.mrb[4].mxu0 }
 0x4d0   : > { %v3161_v14 = vpop.f32.mrb[5].mxu0  ;;  %v1770_v15 = vsel %vm1769_vm6, %v1534_v13, -inf }
 0x4d1   : > { %1771 = vmax.xlane.f32.xlu1 %v1770_v15 }
 0x53a   : > { %v1611_v16 = vpop.f32.mrb[0].mxu1 }
 0x53b   : > { %v3166_v17 = vpop.f32.mrb[1].mxu1  ;;  %v1773_v18 = vsel %vm1769_vm6, %v1611_v16, -inf }
 0x53c   : > { %1774 = vmax.xlane.f32.xlu0 %v1773_v18 }
 0x53e   : > { %v1688_v19 = vpop.f32.mrb[2].mxu1 }
 0x53f   : > { %v3171_v20 = vpop.f32.mrb[3].mxu1  ;;  %v1776_v21 = vsel %vm1769_vm6, %v1688_v19, -inf }
 0x540   : > { %1777 = vmax.xlane.f32.xlu1 %v1776_v21 }
 0x542   : > { %v1765_v22 = vpop.f32.mrb[6].mxu0 }
 0x543   : > { %v3176_v23 = vpop.f32.mrb[7].mxu0  ;;  %v1779_v24 = vsel %vm1769_vm6, %v1765_v22, -inf }
 0x544   : > { %1780 = vmax.xlane.f32.xlu0 %v1779_v24 }
 0x551   : > { %1814 = vrot.lane.b32.xlu1 %v1441_v62, %s3603_s2 }
 0x55e   : > { %v1772_v25 = vpop.xlane.xlu1 %1771 }
 0x55f   : > { %v1782_v26 = vsub.f32 %v1534_v13, %v1772_v25 }
 0x561   : > { %v1786_v27 = vmul.f32 1.442695, %v1782_v26 }
 0x563   : > { %3477 = vpow2.f32 %v1786_v27 }
 0x56d   : > { %v3478_v28 = vpop.eup %3477 }
 0x56e   : > { %v1794_v29 = vsel %vm1769_vm6, %v3478_v28, 0.0 }
 0x575   : > { %1795 = vadd.xlane.f32.xlu1 %v1794_v29  ;;  %v3465_v29 = vld [vmem:[%s3872_s9] sm:$0xff]  }
 0x586   : > { %1970 = vrot.lane.b32.xlu1 %v1451_v3, %s3603_s2 }
 0x5c9   : > { %v1775_v30 = vpop.xlane.xlu0 %1774 }
 0x5ca   : > { %v1783_v31 = vsub.f32 %v1611_v16, %v1775_v30  ;;  %v2964_v16 = vld [vmem:[%s981_s24] ss:$0 sm:$0xff]  ;;  %v3466_v30 = vld [vmem:[%s3872_s9 + $0x8] sm:$0xff]  }
 0x5cc   : > { %v1788_v32 = vmul.f32 1.442695, %v1783_v31 }
 0x5cd   : > { %v1778_v33 = vpop.xlane.xlu1 %1777 }
 0x5ce   : > { %3479 = vpow2.f32 %v1788_v32  ;;  %v1784_v34 = vsub.f32 %v1688_v19, %v1778_v33 }
 0x5d0   : > { %v1790_v35 = vmul.f32 1.442695, %v1784_v34 }
 0x5d1   : > { %v1815_v36 = vpop.permute.xlu1 %1814  ;;  %v1781_v37 = vpop.xlane.xlu0 %1780 }
 0x5d2   : > { %3481 = vpow2.f32 %v1790_v35  ;;  %v1785_v38 = vsub.f32 %v1765_v22, %v1781_v37  ;;  %3178 = vmatpush3.msk.msra.mxu1 %vm1820_vm7, %v1815_v36  ;;  %v2968_v35 = vld [vmem:[%s4568_s1] ss:$0 sm:$0xff]  ;;  %s4579_s1 = sld [smem:[#allocation33_spill]] (!%p2983_p1) }
 0x5d3   : > { %3187 = vmatprep.subr.mxu1 %v3597_v48  ;;  %v2969_v37 = vld [vmem:[%s987_s19] ss:$0 sm:$0xff] }
 0x5d4   : > { %v1792_v39 = vmul.f32 1.442695, %v1785_v38 }
 0x5d6   : > { %3483 = vpow2.f32 %v1792_v39 }
 0x5d8   : > { %v3480_v41 = vpop.eup %3479 }
 0x5d9   : > { %v1797_v42 = vsel %vm1769_vm6, %v3480_v41, 0.0 }
 0x5da   : > { %1798 = vadd.xlane.f32.xlu0 %v1797_v42  ;;  %v3468_v42 = vld [vmem:[%s3886_s8 + $0x8] sm:$0xff]  }
 0x5dc   : > { %v3482_v43 = vpop.eup %3481 }
 0x5dd   : > { %v1800_v44 = vsel %vm1769_vm6, %v3482_v43, 0.0 }
 0x5de   : > { %1801 = vadd.xlane.f32.xlu1 %v1800_v44  ;;  %v3470_v44 = vld [vmem:[%s3886_s8 + $0x18] sm:$0xff]  }
 0x5e0   : > { %v3484_v45 = vpop.eup %3483 }
 0x5e1   : > { %v1803_v46 = vsel %vm1769_vm6, %v3484_v45, 0.0 }
 0x5e2   : > { %1804 = vadd.xlane.f32.xlu0 %v1803_v46  ;;  %v3472_v46 = vld [vmem:[%s3886_s8 + $0x28] sm:$0xff]  }
 0x5ef   : > { %2047 = vrot.lane.b32.xlu1 %v4233_v4, %s3603_s2 }
 0x5f8   : > { %1893 = vrot.lane.b32.xlu0 %v4230_v2, %s3603_s2  ;;  %v3464_v2 = vld [vmem:[%s3855_s26 + $0x8] sm:$0xff]   ;;  %s4571_s2 = smov (!%p2983_p1), %s4570_s27 }
 0x602   : > { %v1796_v47 = vpop.xlane.xlu1 %1795 }
 0x603   : > { %3485 = vrcp.f32 %v1796_v47  ;;  %v3473_v47 = vld [vmem:[%s3886_s8 + $0x30] sm:$0xff]  }
 0x606   : > { %v1971_v51 = vpop.permute.xlu1 %1970 }
 0x60d   : > { %v3486_v49 = vpop.eup %3485 }
 0x60e   : > { %v1810_v50 = vmul.f32 %v3486_v49, %v3478_v28  ;;  %v3474_v49 = vld [vmem:[%s3886_s8 + $0x38] sm:$0xff]  }
 0x610   : > { %3180 = vmatmul.mubr.msk.f32.vlgmr.msra.gmra.mrb[4].mxu1 %vm1816_vm8, %v1810_v50  ;;  %v2970_v50 = vld [vmem:[%s995_s29] ss:$0 sm:$0xff] }
 0x611   : > { %3188 = vmatpush3.msk.msra.mxu1 %vm1820_vm7, %v1971_v51  ;;  %3189 = vmatprep.mubr.msk.f32.mxu1 %vm3598_vm3, %v3597_v48 }
 0x612   : > { %3213 = vmatprep.subr.bf16.mxu1 %v3597_v48 }
 0x667   : > { %v1799_v52 = vpop.xlane.xlu0 %1798 }
 0x668   : > { %3487 = vrcp.f32 %v1799_v52 }
 0x66b   : > { %v1802_v53 = vpop.xlane.xlu1 %1801 }
 0x66c   : > { %3489 = vrcp.f32 %v1802_v53 }
 0x66f   : > { %v1805_v54 = vpop.xlane.xlu0 %1804  ;;  %v2048_v58 = vpop.permute.xlu1 %2047 }
 0x670   : > { %3491 = vrcp.f32 %v1805_v54 }
 0x672   : > { %v3488_v55 = vpop.eup %3487 }
 0x673   : > { %v1811_v56 = vmul.f32 %v3488_v55, %v3480_v41  ;;  %v1894_v57 = vpop.permute.xlu0 %1893 }
 0x674   : > { %3183 = vmatpush3.msk.msra.mxu0 %vm1820_vm7, %v1894_v57 }
 0x675   : > { %3185 = vmatmul.mubr.msk.f32.vlgmr.msra.gmra.mrb[8].mxu0 %vm1816_vm8, %v1811_v56  ;;  %3192 = vmatprep.subr.mxu0 %v3597_v48 }
 0x676   : > { %v3490_v59 = vpop.eup %3489  ;;  %3193 = vmatpush3.msk.msra.mxu0 %vm1820_vm7, %v2048_v58  ;;  %3194 = vmatprep.mubr.msk.f32.mxu0 %vm3598_vm3, %v3597_v48 }
 0x677   : > { %v1812_v60 = vmul.f32 %v3490_v59, %v3482_v43  ;;  %3197 = vmatprep.subr.bf16.mxu0 %v3597_v48  ;;  %v3469_v43 = vld [vmem:[%s3886_s8 + $0x10] sm:$0xff]  }
 0x679   : > { %3190 = vmatmul.mubr.msk.f32.vlgmr.msra.gmra.mrb[6].mxu1 %vm1816_vm8, %v1812_v60 }
 0x67a   : > { %v3492_v61 = vpop.eup %3491  ;;  %3229 = vmatprep.mubr.msk.bf16.mxu1 %vm3598_vm3, %v3597_v48 }
 0x67b   : > { %v1813_v62 = vmul.f32 %v3492_v61, %v3484_v45  ;;  %v3471_v45 = vld [vmem:[%s3886_s8 + $0x20] sm:$0xff]  }
 0x67d   : > { %3195 = vmatmul.mubr.msk.f32.vlgmr.msra.gmra.mrb[10].mxu0 %vm1816_vm8, %v1813_v62 }
 0x67e   : > { %3201 = vmatprep.mubr.msk.bf16.mxu0 %vm3598_vm3, %v3597_v48  ;;  %3198 = vmatpush3.bf16.msra.mxu0 %v3463_v1  ;;  %v2974_v1 = vld [vmem:[%s4569_s20] ss:$0 sm:$0xff] }
 0x67f   : > { %3199 = vmatprep.subr.bf16.mxu0 %v3597_v48 }
 0x682   : > { %3200 = vmatpush3.bf16.msra.mxu0 %v3464_v2 }
 0x683   : > { %3205 = vmatprep.subr.bf16.mxu0 %v3597_v48 }
 0x6e3   : > { %v1889_v63 = vpop.f32.mrb[4].mxu1 }
 0x6e4   : > { %v3181_v0 = vpop.f32.mrb[5].mxu1 }
 0x748   : > { %v1966_v3 = vpop.f32.mrb[8].mxu0 }
 0x749   : > { %2125 = vrot.lane.b32.xlu0 %v1966_v3, %s3604_s30  ;;  %v3186_v4 = vpop.f32.mrb[9].mxu0  ;;  %s4576_s30 = sld [smem:[#allocation17_spill]] (!%p2983_p1) }
 0x74c   : > { %v2043_v5 = vpop.f32.mrb[6].mxu1 }
 0x74d   : > { %2129 = vrot.lane.b32.xlu1 %v2043_v5, %s3605_s21  ;;  %v3191_v6 = vpop.f32.mrb[7].mxu1  ;;  %s4582_s21 = sld [smem:[#allocation37_spill]] (!%p2983_p1) }
 0x74f   : > { %s4580_s9 = scalar_lea.vmem (!%p2983_p1), %s4579_s1, %s4576_s30 }
 0x750   : > { %v2120_v7 = vpop.f32.mrb[10].mxu0 }
 0x751   : > { %2133 = vrot.lane.b32.xlu0 %v2120_v7, %s3606_s0  ;;  %v3196_v8 = vpop.f32.mrb[11].mxu0  ;;  %s4577_s0 = sld [smem:[#allocation36_spill]] (!%p2983_p1) }
 0x757   : > { %s4578_s26 = smov (!%p2983_p1), %s4577_s0 }
 0x7bb   : > { %v2126_v9 = vpop.permute.xlu0 %2125 }
 0x7bc   : > { %v2136_v11 = vsel %vm1462_vm5, %v1889_v63, %v2126_v9 }
 0x7bf   : > { %v2130_v10 = vpop.permute.xlu1 %2129 }
 0x7c0   : > { %v2138_v12 = vsel %vm2137_vm9, %v2136_v11, %v2130_v10 }
 0x7c3   : > { %v2134_v13 = vpop.permute.xlu0 %2133 }
 0x7c4   : > { %v2140_v14 = vsel %vm2139_vm10, %v2138_v12, %v2134_v13 }
 0x7c5   : > { %v2141_v15 = vpack.c.bf16 %v2140_v14, %v2140_v14  ;;  %v2461_v14 = vld [vmem:[%s4570_s27] sm:$0xff] (!%p2983_p1) }
 0x7c7   : > { %3202 = vmatmul.mubr.msk.bf16.vlgmr.msra.gmra.mrb[12].mxu0 %vm1402_vm4, %v2141_v15  ;;  %v2462_v15 = vld [vmem:[%s4571_s2 + $0x8] sm:$0xff] (!%p2983_p1) }
 0x7c8   : > { %3209 = vmatprep.mubr.msk.bf16.mxu0 %vm3598_vm3, %v3597_v48  ;;  %3206 = vmatpush3.bf16.msra.mxu0 %v3465_v29 }
 0x7c9   : > { %3207 = vmatprep.subr.bf16.mxu0 %v3597_v48 }
 0x7cc   : > { %3208 = vmatpush3.bf16.msra.mxu0 %v3466_v30 }
 0x89a   : > { %v2202_v17 = vpop.f32.mrb[12].mxu0 }
 0x89b   : > { %v2203_v18 = vadd.f32 %v2964_v16, %v2202_v17  ;;  %v3203_v19 = vpop.f32.mrb[13].mxu0  ;;  %v2463_v16 = vld [vmem:[%s4571_s2 + $0x10] sm:$0xff] (!%p2983_p1)  ;;  %v3607_v17 = vmov (!%p2983_p1), 0.0|0.0  }
 0x89c   : > { %v2205_v20 = vpop.f32.mrb[14].mxu0  ;;  %3358 = vmatprep.subr.bf16.mxu0 (!%p2983_p1), %v3607_v17  ;;  %v2464_v19 = vld [vmem:[%s4571_s2 + $0x18] sm:$0xff] (!%p2983_p1) }
 0x89d   : > { %v4307_v21 = vadd.f32 %v2203_v18, %v4196_v40  ;;  %v3204_v22 = vpop.f32.mrb[15].mxu0  ;;  %v3467_v40 = vld [vmem:[%s3886_s8] sm:$0xff]   ;;  %v3359_v18 = vpack.c.bf16 (!%p2983_p1), %v2462_v15, %v2461_v14  ;;  %v3609_v20 = vmov (!%p2983_p1), 0.0   ;;  %s4574_s8 = sld [smem:[#allocation32_spill]] (!%p2983_p1) }
 0x89e   : > { %3214 = vmatpush3.bf16.msra.mxu1 %v3467_v40 }
 0x89f   : > { %v2211_v23 = vsel %vm1349_vm2, %v4307_v21, 0.0  ;;  %3215 = vmatprep.subr.bf16.mxu1 %v3597_v48 }
 0x8a0   : > { %2212 = vadd.xlane.f32.xlu1 %v2211_v23 }
 0x8a2   : > { %3216 = vmatpush3.bf16.msra.mxu1 %v3468_v42 }
 0x8a3   : > { %3217 = vmatprep.subr.bf16.mxu1 %v3597_v48  ;;  %v2986_v40 = vld [vmem:[%s4574_s8] ss:$0 sm:$0xff] (!%p2983_p1) }
 0x8a6   : > { %3218 = vmatpush3.bf16.msra.mxu1 %v3469_v43 }
 0x8a7   : > { %3219 = vmatprep.subr.bf16.mxu1 %v3597_v48 }
 0x8aa   : > { %3220 = vmatpush3.bf16.msra.mxu1 %v3470_v44 }
 0x8ab   : > { %3221 = vmatprep.subr.bf16.mxu1 %v3597_v48 }
 0x8ae   : > { %3222 = vmatpush3.bf16.msra.mxu1 %v3471_v45 }
 0x8af   : > { %3223 = vmatprep.subr.bf16.mxu1 %v3597_v48 }
 0x8b2   : > { %3224 = vmatpush3.bf16.msra.mxu1 %v3472_v46 }
 0x8b3   : > { %3225 = vmatprep.subr.bf16.mxu1 %v3597_v48 }
 0x8b6   : > { %3226 = vmatpush3.bf16.msra.mxu1 %v3473_v47 }
 0x8b7   : > { %3227 = vmatprep.subr.bf16.mxu1 %v3597_v48 }
 0x8ba   : > { %3228 = vmatpush3.bf16.msra.mxu1 %v3474_v49 }
 0x8bb   : > { %3364 = vmatprep.subr.bf16.mxu1 (!%p2983_p1), %v3607_v17 }
 0x92d   : > { %v2213_v24 = vpop.xlane.xlu1 %2212 }
 0x92e   : > { %v2214_v25 = vmul.f32 0.03125, %v2213_v24 }
 0x930   : > { %v2215_v26 = vsub.f32 %v4307_v21, %v2214_v25 }
 0x932   : > { %v2216_v27 = vmul.f32 %v2215_v26, %v2215_v26 }
 0x934   : > { %v2217_v28 = vsel %vm1349_vm2, %v2216_v27, 0.0 }
 0x935   : > { %2218 = vadd.xlane.f32.xlu0 %v2217_v28  ;;  %v2985_v28 = vld [vmem:[%s4573_s23] ss:$0 sm:$0xff] (!%p2983_p1) }
 0x9c2   : > { %v2219_v31 = vpop.xlane.xlu0 %2218 }
 0x9c3   : > { %v2220_v32 = vmul.f32 0.03125, %v2219_v31 }
 0x9c5   : > { %v2221_v33 = vadd.f32 1e-06, %v2220_v32 }
 0x9c7   : > { %3493 = vrsqrt.f32 %v2221_v33 }
 0x9d1   : > { %v3494_v34 = vpop.eup %3493 }
 0x9d2   : > { %v2223_v36 = vmul.f32 %v3494_v34, %v2215_v26  ;;  %v2984_v26 = vld [vmem:[%s4572_s25] ss:$0 sm:$0xff] (!%p2983_p1) }
 0x9d4   : > { %v2230_v38 = vmul.f32 %v2968_v35, %v2223_v36  ;;  %v2562_v36 = vld [vmem:[%s4575_s6] sm:$0xff] (!%p2983_p1) }
 0x9d6   : > { %v2237_v39 = vadd.f32 %v2969_v37, %v2230_v38  ;;  %v2563_v37 = vld [vmem:[%s4575_s6 + $0x8] sm:$0xff] (!%p2983_p1) }
 0x9d7   : > { %v3365_v38 = vpack.c.bf16 (!%p2983_p1), %v2563_v37, %v2562_v36 }
 0x9d8   : > { %v2238_v41 = vpack.c.bf16 %v2237_v39, %v2237_v39 }
 0x9da   : > { %3210 = vmatmul.mubr.msk.bf16.vlgmr.msra.gmra.mrb[16].mxu0 %vm1402_vm4, %v2238_v41 }
 0x9db   : > { %3241 = vmatprep.mubr.msk.f32.mxu0 (!%p2983_p1), %vm3608_vm11, %v3609_v20  ;;  %3360 = vmatpush3.bf16.msra.mxu0 (!%p2983_p1), %v3359_v18 }
 0x9dc   : > { %3361 = vmatprep.subr.bf16.mxu0 (!%p2983_p1), %v3607_v17 }
 0xaad   : > { %v2299_v51 = vpop.f32.mrb[16].mxu0 }
 0xaae   : > { %v2300_v52 = vadd.f32 %v2970_v50, %v2299_v51  ;;  %v3211_v53 = vpop.f32.mrb[17].mxu0  ;;  %v2638_v50 = vld [vmem:[%s4577_s0] sm:$0xff] (!%p2983_p1)  ;;  %v2639_v51 = vld [vmem:[%s4578_s26 + $0x8] sm:$0xff] (!%p2983_p1) }
 0xaaf   : > { %v2302_v54 = vpop.f32.mrb[18].mxu0  ;;  %v2560_v53 = vld [vmem:[%s4580_s9] sm:$0x1] (!%p2983_p1) }
 0xab0   : > { %v2306_v55 = vmul.f32 0.044715, %v2300_v52  ;;  %v3212_v56 = vpop.f32.mrb[19].mxu0  ;;  %v2305_v48 = vmul.f32 0.5, %v2300_v52 }
 0xab2   : > { %v2307_v57 = vmul.f32 %v2306_v55, %v2300_v52  ;;  %v3368_v55 = vpack.c.bf16 (!%p2983_p1), %v2639_v51, %v2638_v50 }
 0xab4   : > { %v2308_v58 = vmul.f32 %v2307_v57, %v2300_v52  ;;  %v2640_v57 = vld [vmem:[%s4578_s26 + $0x10] sm:$0xff] (!%p2983_p1) }
 0xab6   : > { %v2309_v59 = vadd.f32 %v2308_v58, %v2300_v52  ;;  %v2641_v58 = vld [vmem:[%s4578_s26 + $0x18] sm:$0xff] (!%p2983_p1) }
 0xab8   : > { %v2310_v60 = vmul.f32 0.7978846, %v2309_v59  ;;  %v3371_v59 = vpack.c.bf16 (!%p2983_p1), %v2641_v58, %v2640_v57 }
 0xaba   : > { %3495 = vtanh.f32 %v2310_v60  ;;  %v2564_v60 = vld [vmem:[%s4581_s4] sm:$0x1] (!%p2983_p1) }
 0xac4   : > { %v3496_v61 = vpop.eup %3495 }
 0xac5   : > { %v2312_v62 = vadd.f32 1.0, %v3496_v61 }
 0xac7   : > { %v2313_v63 = vmul.f32 %v2312_v62, %v2305_v48 }
 0xac9   : > { %v2314_v0 = vpack.c.bf16 %v2313_v63, %v2313_v63  ;;  %v2642_v63 = vld [vmem:[%s4582_s21] sm:$0x1] (!%p2983_p1) }
 0xacb   : > { %3230 = vmatmul.mubr.bf16.vlgmr.msra.gmra.mrb[8].mxu1 %v2314_v0 }
 0xacc   : > { %3248 = vmatprep.mubr.msk.f32.mxu1 (!%p2983_p1), %vm3608_vm11, %v3609_v20  ;;  %3366 = vmatpush3.bf16.msra.mxu1 (!%p2983_p1), %v3365_v38 }
 0xacd   : > { %3367 = vmatprep.subr.bf16.mxu1 (!%p2983_p1), %v3607_v17 }
 0xb9d   : > { %2431 = sbr.rel (%p2983_p1) target bundleno = 4110 (0x100e), region = 132 }
 0xb9e   : > { %v2420_v2 = vpop.f32.mrb[8].mxu1 }
 0xb9f   : > { %v2421_v3 = vadd.f32 %v2974_v1, %v2420_v2  ;;  %v3231_v4 = vpop.f32.mrb[9].mxu1 }
 0xba0   : > { %v2423_v5 = vpop.f32.mrb[10].mxu1 }
 0xba1   : > { %v2426_v6 = vadd.f32 %v2421_v3, %v4307_v21  ;;  %v3232_v7 = vpop.f32.mrb[11].mxu1  ;;  %v3362_v21 = vpack.c.bf16 (!%p2983_p1), %v2464_v19, %v2463_v16 }
 0xba3   : > { %2427 = vst.msk [vmem:[#allocation2] sm:$0x1f] %vm1349_vm2, %v2426_v6  ;;  %v2434_v8 = vsel (!%p2983_p1), %vm1349_vm2, %v2426_v6, 0.0  ;;  %3363 = vmatpush3.bf16.msra.mxu0 (!%p2983_p1), %v3362_v21 }
 0xba4   : > { %2435 = vadd.xlane.f32.xlu0 %v2434_v8 }
 0xc31   : > { %v2436_v9 = vpop.xlane.xlu0 %2435 }
 0xc32   : > { %v2437_v10 = vmul.f32 0.03125, %v2436_v9 }
 0xc34   : > { %v2438_v11 = vsub.f32 %v2426_v6, %v2437_v10 }
 0xc36   : > { %v2439_v12 = vmul.f32 %v2438_v11, %v2438_v11 }
 0xc38   : > { %v2440_v13 = vsel %vm1349_vm2, %v2439_v12, 0.0 }
 0xc39   : > { %2441 = vadd.xlane.f32.xlu0 %v2440_v13 }
 0xcc6   : > { %v2442_v22 = vpop.xlane.xlu0 %2441 }
 0xcc7   : > { %v2443_v23 = vmul.f32 0.03125, %v2442_v22 }
 0xcc9   : > { %v2444_v24 = vadd.f32 1e-06, %v2443_v23 }
 0xccb   : > { %3497 = vrsqrt.f32 %v2444_v24 }
 0xcd5   : > { %v3498_v25 = vpop.eup %3497 }
 0xcd6   : > { %v2446_v27 = vmul.f32 %v3498_v25, %v2438_v11 }
 0xcd8   : > { %v2453_v29 = vmul.f32 %v2984_v26, %v2446_v27 }
 0xcda   : > { %v2460_v30 = vadd.f32 %v2985_v28, %v2453_v29 }
 0xcdc   : > { %3242 = vmatmul.mubr.msk.f32.vlgmr.msra.gmra.mrb[0].mxu0 %vm1402_vm4, %v2460_v30 }
 0xdaf   : > { %v2541_v31 = vpop.f32.mrb[0].mxu0 }
 0xdb0   : > { %v2542_v32 = vadd.f32 %v2986_v40, %v2541_v31  ;;  %v3243_v33 = vpop.f32.mrb[1].mxu0 }
 0xdb2   : > { %v2545_v34 = vmul.f32 %v2542_v32, %v2542_v32 }
 0xdb4   : > { %v2547_v35 = vsel %vm2546_vm12, %v2545_v34, 0.0 }
 0xdb5   : > { %2548 = vadd.xlane.f32.xlu1 %v2547_v35 }
 0xe42   : > { %v2549_v39 = vpop.xlane.xlu1 %2548 }
 0xe43   : > { %v2550_v41 = vsel %vm1820_vm7, %v2549_v39, 0.0 }
 0xe44   : > { %v2551_v42 = vrot.slane %v2550_v41, 4 }
 0xe46   : > { %v2552_v43 = vadd.f32 %v2551_v42, %v2550_v41 }
 0xe48   : > { %v2553_v44 = vrot.slane %v2552_v43, 2 }
 0xe4a   : > { %v2554_v45 = vadd.f32 %v2553_v44, %v2552_v43 }
 0xe4c   : > { %v2555_v46 = vrot.slane %v2554_v45, 1 }
 0xe4e   : > { %v2556_v47 = vadd.f32 %v2555_v46, %v2554_v45 }
 0xe50   : > { %v2557_v49 = vmul.f32 0.025, %v2556_v47 }
 0xe52   : > { %3499 = vrsqrt.f32 %v2557_v49 }
 0xe5c   : > { %v3500_v52 = vpop.eup %3499 }
 0xe5d   : > { %v2559_v54 = vmul.f32 %v3500_v52, %v2542_v32 }
 0xe5f   : > { %v2561_v56 = vadd.f32 %v2560_v53, %v2559_v54 }
 0xe61   : > { %3249 = vmatmul.mubr.msk.f32.vlgmr.msra.gmra.mrb[0].mxu1 %vm2137_vm9, %v2561_v56 }
 0xe62   : > { %3369 = vmatpush3.bf16.msra.mxu1 %v3368_v55  ;;  %3259 = vmatprep.mubr.msk.f32.mxu1 %vm3608_vm11, %v3609_v20 }
 0xe63   : > { %3370 = vmatprep.subr.bf16.mxu1 %v3607_v17 }
 0xe66   : > { %3372 = vmatpush3.bf16.msra.mxu1 %v3371_v59 }
 0xf34   : > { %v2634_v61 = vpop.f32.mrb[0].mxu1 }
 0xf35   : > { %v2635_v48 = vadd.f32 %v2634_v61, %v2564_v60  ;;  %v3250_v62 = vpop.f32.mrb[1].mxu1 }
 0xf37   : > { %3260 = vmatmul.mubr.msk.f32.vlgmr.msra.gmra.mrb[2].mxu1 %vm1402_vm4, %v2635_v48 }
0x100a   : > { %v2712_v0 = vpop.f32.mrb[2].mxu1 }
0x100b   : > { %v2713_v1 = vadd.f32 %v2712_v0, %v2642_v63  ;;  %v3261_v2 = vpop.f32.mrb[3].mxu1 }
0x100d   : > { %2717 = vst.msk [vmem:[%s3890_s18] sm:$0x1] %vm2716_vm13, %v2713_v1 }
0x100e PF: > { %s4583_s28 = sld [smem:[#allocation8_spill]]  ;;  %s2731_s9 = sshll.u32 %s3890_s18, 4  ;;  %s2732_s9 = int_to_ptr.vmem [resolvable:$true] %s2731_s9 }
0x100f   : > { %s4585_s25 = sld [smem:[#allocation38_spill]]  ;;  %s4586_s23 = sand.u32 1, %s3571_s3  }
0x1010   : > { %s2719_s19 = scalar_lea.sflag [#allocation4], %s4586_s23  ;;  %s3501_s17 = scalar_lea.vmem %s2732_s9, 16 }
0x1011   : > { %p3502_p2 = scmp.ne.s32.totalorder %s2732_s9, %s3501_s17  ;;  %s3610_s8 = smov [#allocation3]  }
0x1012   : > { %s3505_s29 = sshll.u32 %s3610_s8, 4  ;;  %s3506_s29 = int_to_ptr.vmem [resolvable:$false] %s3505_s29 }
0x1013   : > { %p3503_p4 = pnand %p3502_p2, %p3795_p3  ;;  %s3507_s20 = scalar_lea.vmem %s3506_s29, 32 }
0x1014   : > { %s2990_s22 = sshll.u32 %s4583_s28, 4  ;;  %p3508_p6 = scmp.lt.s32.totalorder %s2732_s9, %s3506_s29 }
0x1015   : > { %s4419_s1 = scalar_lea.hbm %s4585_s25, %s2990_s22  ;;  %p3504_p5 = pneg %p3503_p4 }
0x1016   : > { %p3509_p7 = scmp.lt.s32.totalorder %s3507_s20, %s3501_s17 }
0x1018   : > { %p3510_p8 = por %p3509_p7, %p3508_p6 }
0x101a   : > { %p3511_p10 = pnand %p3510_p8, %p3504_p5 }
0x101c   : > { %3514 = shalt.err (!%p3511_p10)
}
0x101d   : > { %s3515_s18 = scalar_lea.hbm %s4419_s1, 16  ;;  %s3519_s30 = scalar_lea.hbm %s4585_s25, 32 }
0x101e   : > { %p3516_p11 = scmp.ne.s32.totalorder %s4419_s1, %s3515_s18  ;;  %p3520_p0 = scmp.lt.u32.totalorder %s4419_s1, %s4585_s25 }
0x101f   : > { %p3521_p1 = scmp.lt.u32.totalorder %s3519_s30, %s3515_s18  ;;  %p3523_p4 = scmp.lt.u32.totalorder %s3515_s18, %s4419_s1 }
0x1020   : > { %p3517_p12 = pnand %p3516_p11, %p3795_p3 }
0x1021   : > { %p3522_p2 = por %p3521_p1, %p3520_p0 }
0x1022   : > { %p3518_p13 = pneg %p3517_p12 }
0x1023   : > { %p3524_p5 = por %p3523_p4, %p3522_p2 }
0x1025   : > { %p3525_p6 = pnand %p3524_p5, %p3518_p13 }
0x1027   : > { %3528 = shalt.err (!%p3525_p6)
}
0x1028   : > { %3374 = dma.vmem_to_hbm [thread:$0]  (%p3795_p3), %s2732_s9, 16, %s4419_s1, %s2719_s19  }
0x1029 PF: > { %s4587_s22 = sld [smem:[#allocation11_spill]]  ;;  %s4588_s7 = sld [smem:[#allocation6_spill]] }
0x102f   : > { %p3380_p7 = scmp.ge.s32.totalorder %s4587_s22, 2  ;;  %s2743_s23 = sand.u32 1, %s4588_s7  }
0x1030   : > { %s2744_s17 = scalar_lea.sflag [#allocation4], %s2743_s23 }
0x1031   : > { %p3377_p8 = pnand %p3380_p7, %p3805_p9 }
0x1033   : > { %3562 = dma.done.wait (!%p3377_p8), %s2744_s17, 16  }
0x1034   : > { %3564 = vsyncadd (!%p3377_p8), %s2744_s17, 4294967280  ;;  %s39_s0 = sadd.s32 1, %s4587_s22   ;;  %s4590_s8 = sld [smem:[#allocation7_spill]] }
0x1035   : > { %p36_p10 = scmp.ge.s32.totalorder %s39_s0, 6   ;;  %s4591_s7 = sld [smem:[#allocation16_spill]] }
0x1036   : > { %s4592_s28 = sld [smem:[#allocation9_spill]]  ;;  %s4593_s29 = sld [smem:[#allocation10_spill]] }
0x1037   : > { %s4594_s4 = sld [smem:[#allocation12_spill]]  ;;  %s4595_s1 = sld [smem:[#allocation14_spill]] }
0x1038   : > { %s4596_s27 = smov %s3571_s3  ;;  %38 = sbr.rel (!%p36_p10) target bundleno = 27 (0x1b), region = 206 }
0x103a   : > { %s4597_s3 = smov %s4590_s8 }
0x103c   : > { %s4598_s8 = smov %s4593_s29 }
0x103d   : > { %s4599_s29 = smov %s4595_s1 }
0x103f   :  { %2748 = vsyncpa [#allocation4], 1 }
0x1040   :  { %2750 = vsyncpa [#allocation4 + $0x1], 1 }

</bundles_post_ra>
